<compile_context>
chip_gen: v5e
topology: v5e:2x2
jax: 0.10.0
libtpu: 0.0.40
codegen_flags: <defaults>
</compile_context>

<pallas_src>
import functools

import jax
import jax.numpy as jnp
import numpy as np
from jax.experimental import pallas as pl
from jax.experimental.pallas import tpu as pltpu

_LANE = 128


def _round_up(x, m):
    return ((x + m - 1) // m) * m


# ----------------------------------------------------------------------------
# Pallas kernel: whole forward for one (BLOCK_ROWS, .) batch tile in 3 fused
# MXU pushes + masked segment softmax, one lane-dense (BLOCK_ROWS, 128) store.
# ----------------------------------------------------------------------------
def _hier_policy_kernel(x_ref, p_ref, out_ref, *, k1p, num_high, num_low, hidden):
    H = hidden
    off_w2 = k1p                       # 8-aligned (k1p is a multiple of 8)
    off_w3 = off_w2 + _LANE
    off_b = off_w3 + _LANE

    x = x_ref[...]                                           # (Bt, k1p)

    # Static slab views (slab DMA'd once, resident across grid iterations).
    w1 = p_ref[0:k1p, :]                                     # (k1p, 128)
    w2 = p_ref[off_w2:off_w2 + _LANE, :]                     # (128, 128)
    w3 = p_ref[off_w3:off_w3 + _LANE, :]                     # (128, 128)
    b2 = p_ref[off_b:off_b + 1, :]                           # (1, 128)
    b3 = p_ref[off_b + 1:off_b + 2, :]                       # (1, 128)

    # --- layer 1: all four layer-1 linears + their biases in ONE MXU push ---
    # x = [state | one_hot | 1 | 0-pad]; the bias lives in W1's ones-row.
    # cols: [high 0:H | hval H:2H | low 2H:3H | lval 3H:4H]
    h1 = jnp.maximum(jnp.dot(x, w1, preferred_element_type=jnp.float32), 0.0)

    # --- layer 2 (block-diagonal: hw2 | lw2 | hvw2 | lvw2) -------------------
    z2 = jnp.dot(h1, w2, preferred_element_type=jnp.float32) + b2   # (Bt, 128)
    lane = jax.lax.broadcasted_iota(jnp.int32, z2.shape, 1)
    # ReLU only on the policy hidden lanes; value scalars (lanes 2H, 2H+1) pass.
    h2 = jnp.where(lane < 2 * H, jnp.maximum(z2, 0.0), z2)

    # --- layer 3 (block-diagonal hw3 | lw3 + identity routing of values) ----
    z3 = jnp.dot(h2, w3, preferred_element_type=jnp.float32) + b3   # (Bt, 128)
    # layout: [high logits 0:nh | low logits nh:nh+nl | hv | lv | zeros]

    # --- segment-wise softmax on the full-width vreg -------------------------
    nh, nl = num_high, num_low
    seg_hi = lane < nh
    seg_lo = (lane >= nh) & (lane < nh + nl)
    is_val = (lane >= nh + nl) & (lane < nh + nl + 2)

    # Per-segment maxes kept (vs. one shared shift): avoids underflowing an
    # entire segment when its logits are far below the other's max. XLU has
    # slack at this size (review marks this low priority).
    neg_inf = jnp.float32(-jnp.inf)
    m_hi = jnp.max(jnp.where(seg_hi, z3, neg_inf), axis=-1, keepdims=True)
    m_lo = jnp.max(jnp.where(seg_lo, z3, neg_inf), axis=-1, keepdims=True)
    shift = jnp.where(seg_hi, m_hi, jnp.where(seg_lo, m_lo, z3))
    e = jnp.exp(z3 - shift)                                  # == 1 off-policy lanes
    s_hi = jnp.sum(jnp.where(seg_hi, e, 0.0), axis=-1, keepdims=True)
    s_lo = jnp.sum(jnp.where(seg_lo, e, 0.0), axis=-1, keepdims=True)
    denom = jnp.where(seg_hi, s_hi, jnp.where(seg_lo, s_lo, 1.0))
    # Exact reciprocal: probabilities may feed a sampler / log-prob downstream.
    probs = e * pl.reciprocal(denom, approx=False)

    result = jnp.where(seg_hi | seg_lo, probs, jnp.where(is_val, z3, 0.0))
    out_ref[...] = result                                    # one unmasked store


# ----------------------------------------------------------------------------
# Parameter init (deterministic, PyTorch-nn.Linear-style uniform bounds).
# Weights stored (in_features, out_features); biases (1, out_features).
# ----------------------------------------------------------------------------
def _init_linear(key, fan_in, fan_out):
    kw, kb = jax.random.split(key)
    bound = 1.0 / np.sqrt(fan_in)
    w = jax.random.uniform(kw, (fan_in, fan_out), jnp.float32, -bound, bound)
    b = jax.random.uniform(kb, (1, fan_out), jnp.float32, -bound, bound)
    return w, b


def make_params(key, state_dim, num_high, num_low, hidden):
    keys = jax.random.split(key, 10)
    p = {}
    p["hw1"], p["hb1"] = _init_linear(keys[0], state_dim, hidden)
    p["hw2"], p["hb2"] = _init_linear(keys[1], hidden, hidden)
    p["hw3"], p["hb3"] = _init_linear(keys[2], hidden, num_high)
    p["lw1"], p["lb1"] = _init_linear(keys[3], state_dim + num_high, hidden)
    p["lw2"], p["lb2"] = _init_linear(keys[4], hidden, hidden)
    p["lw3"], p["lb3"] = _init_linear(keys[5], hidden, num_low)
    p["hvw1"], p["hvb1"] = _init_linear(keys[6], state_dim, hidden)
    p["hvw2"], p["hvb2"] = _init_linear(keys[7], hidden, 1)
    p["lvw1"], p["lvb1"] = _init_linear(keys[8], state_dim + num_high, hidden)
    p["lvw2"], p["lvb2"] = _init_linear(keys[9], hidden, 1)
    return p


# ----------------------------------------------------------------------------
# One-time packing of all 20 parameters into a single lane-padded f32 slab.
# Rows: [W1+b1 (k1p) | W2 (128) | W3 (128) | b2,b3 (8)]
# ----------------------------------------------------------------------------
def pack_params(p, state_dim, num_high, num_low, hidden):
    H = hidden
    assert 4 * H <= _LANE, "fused layer-1 width must fit in 128 lanes"
    assert num_high + num_low + 2 <= _LANE, "fused output must fit in 128 lanes"

    K1 = state_dim + num_high
    k1p = _round_up(K1 + 1, 8)         # +1 for the constant-1 (bias) column
    off_w2 = k1p
    off_w3 = off_w2 + _LANE
    off_b = off_w3 + _LANE
    total = off_b + 8

    n = lambda a: np.asarray(a, np.float32)
    slab = np.zeros((total, _LANE), np.float32)

    # W1 rows: [state 0:sd | one_hot sd:K1 | bias row K1 | zero pad]
    # cols:    [high 0:H | hval H:2H | low 2H:3H | lval 3H:4H]
    slab[0:state_dim, 0:H] = n(p["hw1"])
    slab[0:state_dim, H:2 * H] = n(p["hvw1"])
    slab[0:K1, 2 * H:3 * H] = n(p["lw1"])
    slab[0:K1, 3 * H:4 * H] = n(p["lvw1"])
    slab[K1, 0:H] = n(p["hb1"]).reshape(-1)          # folded layer-1 biases
    slab[K1, H:2 * H] = n(p["hvb1"]).reshape(-1)
    slab[K1, 2 * H:3 * H] = n(p["lb1"]).reshape(-1)
    slab[K1, 3 * H:4 * H] = n(p["lvb1"]).reshape(-1)

    # W2: block-diagonal; cols [h2_high 0:H | h2_low H:2H | hv 2H | lv 2H+1]
    slab[off_w2 + 0:off_w2 + H, 0:H] = n(p["hw2"])
    slab[off_w2 + 2 * H:off_w2 + 3 * H, H:2 * H] = n(p["lw2"])
    slab[off_w2 + H:off_w2 + 2 * H, 2 * H:2 * H + 1] = n(p["hvw2"])
    slab[off_w2 + 3 * H:off_w2 + 4 * H, 2 * H + 1:2 * H + 2] = n(p["lvw2"])

    # W3: block-diagonal + identity routing of the two value scalars.
    # cols [high_policy 0:nh | low_policy nh:nh+nl | hv | lv]
    slab[off_w3 + 0:off_w3 + H, 0:num_high] = n(p["hw3"])
    slab[off_w3 + H:off_w3 + 2 * H, num_high:num_high + num_low] = n(p["lw3"])
    slab[off_w3 + 2 * H, num_high + num_low] = 1.0
    slab[off_w3 + 2 * H + 1, num_high + num_low + 1] = 1.0

    # b2, b3 packed as rows 0 and 1 of a single 8-row-aligned block.
    slab[off_b, 0:H] = n(p["hb2"]).reshape(-1)
    slab[off_b, H:2 * H] = n(p["lb2"]).reshape(-1)
    slab[off_b, 2 * H] = n(p["hvb2"]).reshape(())
    slab[off_b, 2 * H + 1] = n(p["lvb2"]).reshape(())
    slab[off_b + 1, 0:num_high] = n(p["hb3"]).reshape(-1)
    slab[off_b + 1, num_high:num_high + num_low] = n(p["lb3"]).reshape(-1)

    return jnp.asarray(slab)


# ----------------------------------------------------------------------------
# Wrapper: one pallas_call over a 1-D batch-tile grid.  Stack many env steps'
# states/one-hots into one call; the param slab is fetched once (constant
# index_map) and the batch axis is marked "parallel" (2 TCs on v7x).
# block_rows: 128 fills the MXU rows on v5e; use 256 on v6e/v7x.
# ----------------------------------------------------------------------------
@functools.partial(jax.jit,
                   static_argnames=("num_high", "num_low", "hidden", "block_rows"))
def hierarchical_policy_forward(state, high_action_one_hot, packed_params, *,
                                num_high, num_low, hidden, block_rows=128):
    N, state_dim = state.shape
    K1 = state_dim + num_high
    k1p = _round_up(K1 + 1, 8)
    total_rows = packed_params.shape[0]

    # Augmented lane-dense input: [state | one_hot | 1 | zero pad].
    pieces = [state.astype(jnp.float32),
              high_action_one_hot.astype(jnp.float32),
              jnp.ones((N, 1), jnp.float32)]
    pad_cols = k1p - (K1 + 1)
    if pad_cols:
        pieces.append(jnp.zeros((N, pad_cols), jnp.float32))
    x = jnp.concatenate(pieces, axis=-1)                     # (N, k1p)

    n_pad = _round_up(max(N, block_rows), block_rows)
    if n_pad != N:
        x = jnp.pad(x, ((0, n_pad - N), (0, 0)))             # pad rows are benign

    kernel = functools.partial(
        _hier_policy_kernel,
        k1p=k1p, num_high=num_high, num_low=num_low, hidden=hidden)

    out = pl.pallas_call(
        kernel,
        out_shape=jax.ShapeDtypeStruct((n_pad, _LANE), jnp.float32),
        grid_spec=pltpu.PrefetchScalarGridSpec(
            num_scalar_prefetch=0,
            grid=(n_pad // block_rows,),
            in_specs=[
                pl.BlockSpec((block_rows, k1p), lambda i: (i, 0)),
                # Constant index_map: slab DMA'd once, stays resident in VMEM.
                pl.BlockSpec((total_rows, _LANE), lambda i: (0, 0)),
            ],
            out_specs=pl.BlockSpec((block_rows, _LANE), lambda i: (i, 0)),
        ),
        compiler_params=pltpu.CompilerParams(
            dimension_semantics=("parallel",)),
    )(x, packed_params)

    out = out[:N]
    nh, nl = num_high, num_low
    return {
        "high_policy": out[:, 0:nh],
        "low_policy": out[:, nh:nh + nl],
        "high_value": out[:, nh + nl:nh + nl + 1],
        "low_value": out[:, nh + nl + 1:nh + nl + 2],
        # Matches the PyTorch module, whose expression
        # `high_action if high_action is None else None` always yields None.
        "high_action": None,
    }


# ----------------------------------------------------------------------------
# Pure-JAX reference (for correctness check), full-precision matmuls.
# ----------------------------------------------------------------------------
def _reference_forward(state, high_action_one_hot, p):
    hi = jax.lax.Precision.HIGHEST

    def lin(x, w, b):
        return jnp.dot(x, w, precision=hi) + b

    def softmax(z):
        z = z - jnp.max(z, axis=-1, keepdims=True)
        e = jnp.exp(z)
        return e / jnp.sum(e, axis=-1, keepdims=True)

    low_in = jnp.concatenate([state, high_action_one_hot], axis=-1)
    h = jax.nn.relu(lin(state, p["hw1"], p["hb1"]))
    h = jax.nn.relu(lin(h, p["hw2"], p["hb2"]))
    high_policy = softmax(lin(h, p["hw3"], p["hb3"]))

    l = jax.nn.relu(lin(low_in, p["lw1"], p["lb1"]))
    l = jax.nn.relu(lin(l, p["lw2"], p["lb2"]))
    low_policy = softmax(lin(l, p["lw3"], p["lb3"]))

    hv = lin(jax.nn.relu(lin(state, p["hvw1"], p["hvb1"])), p["hvw2"], p["hvb2"])
    lv = lin(jax.nn.relu(lin(low_in, p["lvw1"], p["lvb1"])), p["lvw2"], p["lvb2"])
    return high_policy, low_policy, hv, lv


if __name__ == "__main__":
    # Small, module-consistent shapes; n_steps stacks many env steps into one
    # call (exercises 2 batch tiles + row padding).
    n_steps = 200
    state_dim = 16
    num_high_actions = 8
    num_low_actions = 32
    hidden_dim = 32

    key = jax.random.PRNGKey(0)
    k_params, k_state, k_act = jax.random.split(key, 3)

    params = make_params(k_params, state_dim, num_high_actions,
                         num_low_actions, hidden_dim)
    packed = pack_params(params, state_dim, num_high_actions,
                         num_low_actions, hidden_dim)

    state = jax.random.normal(k_state, (n_steps, state_dim), jnp.float32)
    # Deterministic one-hot high action (the `high_action is not None` branch).
    high_idx = jax.random.randint(k_act, (n_steps,), 0, num_high_actions)
    high_one_hot = jax.nn.one_hot(high_idx, num_high_actions, dtype=jnp.float32)

    out = hierarchical_policy_forward(
        state, high_one_hot, packed,
        num_high=num_high_actions, num_low=num_low_actions, hidden=hidden_dim)
    jax.block_until_ready(out["low_policy"])

    # Sanity check against the pure-JAX reference.  Tolerances absorb MXU
    # f32 pass-decomposition differences vs. XLA HIGHEST-precision matmuls.
    ref_hp, ref_lp, ref_hv, ref_lv = _reference_forward(state, high_one_hot, params)
    np.testing.assert_allclose(np.asarray(out["high_policy"]), np.asarray(ref_hp),
                               rtol=5e-3, atol=5e-3)
    np.testing.assert_allclose(np.asarray(out["low_policy"]), np.asarray(ref_lp),
                               rtol=5e-3, atol=5e-3)
    np.testing.assert_allclose(np.asarray(out["high_value"]), np.asarray(ref_hv),
                               rtol=5e-3, atol=5e-3)
    np.testing.assert_allclose(np.asarray(out["low_value"]), np.asarray(ref_lv),
                               rtol=5e-3, atol=5e-3)

    assert out["high_policy"].shape == (n_steps, num_high_actions)
    assert out["low_policy"].shape == (n_steps, num_low_actions)
    assert out["high_value"].shape == (n_steps, 1)
    assert out["low_value"].shape == (n_steps, 1)
    print("KERNEL_OK")
</pallas_src>

<mosaic_0001>
module attributes {stable_mosaic.version = 11 : i64} {
  func.func @_hier_policy_kernel(%arg0: i32, %arg1: memref<128x32xf32, #tpu.memory_space<vmem>>, %arg2: memref<296x128xf32, #tpu.memory_space<vmem>>, %arg3: memref<128x128xf32, #tpu.memory_space<vmem>>) attributes {dimension_semantics = [#tpu.dimension_semantics<parallel>], iteration_bounds = array<i64: 2>, scalar_prefetch = 0 : i64, scratch_operands = 0 : i64, tpu.core_type = #tpu.core_type<tc>, window_params = [{transform_indices = @transform_0, window_bounds = array<i64: 128, 32>}, {pipeline_mode = #tpu.pipeline_mode<synchronous>, transform_indices = @transform_1, window_bounds = array<i64: 296, 128>}, {transform_indices = @transform_2, window_bounds = array<i64: 128, 128>}]} {
    %c0 = arith.constant 0 : index
    %c0_0 = arith.constant 0 : index
    %0 = vector.load %arg1[%c0, %c0_0] : memref<128x32xf32, #tpu.memory_space<vmem>>, vector<128x32xf32>
    %c0_1 = arith.constant 0 : index
    %c0_2 = arith.constant 0 : index
    %1 = vector.load %arg2[%c0_1, %c0_2] : memref<296x128xf32, #tpu.memory_space<vmem>>, vector<32x128xf32>
    %c32 = arith.constant 32 : index
    %c0_3 = arith.constant 0 : index
    %2 = vector.load %arg2[%c32, %c0_3] : memref<296x128xf32, #tpu.memory_space<vmem>>, vector<128x128xf32>
    %c160 = arith.constant 160 : index
    %c0_4 = arith.constant 0 : index
    %3 = vector.load %arg2[%c160, %c0_4] : memref<296x128xf32, #tpu.memory_space<vmem>>, vector<128x128xf32>
    %c288 = arith.constant 288 : index
    %c0_5 = arith.constant 0 : index
    %4 = vector.load %arg2[%c288, %c0_5] : memref<296x128xf32, #tpu.memory_space<vmem>>, vector<1x128xf32>
    %c289 = arith.constant 289 : index
    %c0_6 = arith.constant 0 : index
    %5 = vector.load %arg2[%c289, %c0_6] : memref<296x128xf32, #tpu.memory_space<vmem>>, vector<1x128xf32>
    %cst = arith.constant dense<0.000000e+00> : vector<128x128xf32>
    %6 = tpu.matmul %0, %1, %cst {dimension_numbers = #tpu.dot_dimension_numbers<[1], [0], [0], [1], [0, 0, 1, 1], [], []>} : vector<128x32xf32>, vector<32x128xf32>, vector<128x128xf32> -> vector<128x128xf32>
    %cst_7 = arith.constant 0.000000e+00 : f32
    %7 = vector.broadcast %cst_7 : f32 to vector<128x128xf32>
    %8 = arith.maximumf %6, %7 : vector<128x128xf32>
    %cst_8 = arith.constant dense<0.000000e+00> : vector<128x128xf32>
    %9 = tpu.matmul %8, %2, %cst_8 {dimension_numbers = #tpu.dot_dimension_numbers<[1], [0], [0], [1], [0, 0, 1, 1], [], []>} : vector<128x128xf32>, vector<128x128xf32>, vector<128x128xf32> -> vector<128x128xf32>
    %10 = vector.broadcast %4 : vector<1x128xf32> to vector<128x128xf32>
    %11 = arith.addf %9, %10 : vector<128x128xf32>
    %12 = tpu.iota {dimensions = array<i32: 1>} : vector<128x128xi32>
    %c64_i32 = arith.constant 64 : i32
    %13 = vector.broadcast %c64_i32 : i32 to vector<128x128xi32>
    %14 = arith.cmpi slt, %12, %13 : vector<128x128xi32>
    %cst_9 = arith.constant 0.000000e+00 : f32
    %15 = vector.broadcast %cst_9 : f32 to vector<128x128xf32>
    %16 = arith.maximumf %11, %15 : vector<128x128xf32>
    %17 = arith.select %14, %16, %11 : vector<128x128xi1>, vector<128x128xf32>
    %cst_10 = arith.constant dense<0.000000e+00> : vector<128x128xf32>
    %18 = tpu.matmul %17, %3, %cst_10 {dimension_numbers = #tpu.dot_dimension_numbers<[1], [0], [0], [1], [0, 0, 1, 1], [], []>} : vector<128x128xf32>, vector<128x128xf32>, vector<128x128xf32> -> vector<128x128xf32>
    %19 = vector.broadcast %5 : vector<1x128xf32> to vector<128x128xf32>
    %20 = arith.addf %18, %19 : vector<128x128xf32>
    %c8_i32 = arith.constant 8 : i32
    %21 = vector.broadcast %c8_i32 : i32 to vector<128x128xi32>
    %22 = arith.cmpi slt, %12, %21 : vector<128x128xi32>
    %c8_i32_11 = arith.constant 8 : i32
    %23 = vector.broadcast %c8_i32_11 : i32 to vector<128x128xi32>
    %24 = arith.cmpi sge, %12, %23 : vector<128x128xi32>
    %c40_i32 = arith.constant 40 : i32
    %25 = vector.broadcast %c40_i32 : i32 to vector<128x128xi32>
    %26 = arith.cmpi slt, %12, %25 : vector<128x128xi32>
    %27 = arith.andi %24, %26 : vector<128x128xi1>
    %c40_i32_12 = arith.constant 40 : i32
    %28 = vector.broadcast %c40_i32_12 : i32 to vector<128x128xi32>
    %29 = arith.cmpi sge, %12, %28 : vector<128x128xi32>
    %c42_i32 = arith.constant 42 : i32
    %30 = vector.broadcast %c42_i32 : i32 to vector<128x128xi32>
    %31 = arith.cmpi slt, %12, %30 : vector<128x128xi32>
    %32 = arith.andi %29, %31 : vector<128x128xi1>
    %cst_13 = arith.constant 0xFF800000 : f32
    %33 = vector.broadcast %cst_13 : f32 to vector<128x128xf32>
    %34 = arith.select %22, %20, %33 : vector<128x128xi1>, vector<128x128xf32>
    %cst_14 = arith.constant dense<0xFF800000> : vector<128xf32>
    %35 = vector.multi_reduction <maximumf>, %34, %cst_14 [1] : vector<128x128xf32> to vector<128xf32>
    %36 = vector.shape_cast %35 : vector<128xf32> to vector<128x1xf32>
    %cst_15 = arith.constant 0xFF800000 : f32
    %37 = vector.broadcast %cst_15 : f32 to vector<128x128xf32>
    %38 = arith.select %27, %20, %37 : vector<128x128xi1>, vector<128x128xf32>
    %cst_16 = arith.constant dense<0xFF800000> : vector<128xf32>
    %39 = vector.multi_reduction <maximumf>, %38, %cst_16 [1] : vector<128x128xf32> to vector<128xf32>
    %40 = vector.shape_cast %39 : vector<128xf32> to vector<128x1xf32>
    %41 = vector.shape_cast %40 : vector<128x1xf32> to vector<128x1xf32>
    %42 = vector.broadcast %41 : vector<128x1xf32> to vector<128x128xf32>
    %43 = arith.select %27, %42, %20 : vector<128x128xi1>, vector<128x128xf32>
    %44 = vector.shape_cast %36 : vector<128x1xf32> to vector<128x1xf32>
    %45 = vector.broadcast %44 : vector<128x1xf32> to vector<128x128xf32>
    %46 = arith.select %22, %45, %43 : vector<128x128xi1>, vector<128x128xf32>
    %47 = arith.subf %20, %46 : vector<128x128xf32>
    %48 = math.exp %47 : vector<128x128xf32>
    %cst_17 = arith.constant 0.000000e+00 : f32
    %49 = vector.broadcast %cst_17 : f32 to vector<128x128xf32>
    %50 = arith.select %22, %48, %49 : vector<128x128xi1>, vector<128x128xf32>
    %cst_18 = arith.constant dense<0.000000e+00> : vector<128xf32>
    %51 = vector.multi_reduction <add>, %50, %cst_18 [1] : vector<128x128xf32> to vector<128xf32>
    %52 = vector.shape_cast %51 : vector<128xf32> to vector<128x1xf32>
    %cst_19 = arith.constant 0.000000e+00 : f32
    %53 = vector.broadcast %cst_19 : f32 to vector<128x128xf32>
    %54 = arith.select %27, %48, %53 : vector<128x128xi1>, vector<128x128xf32>
    %cst_20 = arith.constant dense<0.000000e+00> : vector<128xf32>
    %55 = vector.multi_reduction <add>, %54, %cst_20 [1] : vector<128x128xf32> to vector<128xf32>
    %56 = vector.shape_cast %55 : vector<128xf32> to vector<128x1xf32>
    %cst_21 = arith.constant 1.000000e+00 : f32
    %57 = vector.shape_cast %56 : vector<128x1xf32> to vector<128x1xf32>
    %58 = vector.broadcast %57 : vector<128x1xf32> to vector<128x128xf32>
    %59 = vector.broadcast %cst_21 : f32 to vector<128x128xf32>
    %60 = arith.select %27, %58, %59 : vector<128x128xi1>, vector<128x128xf32>
    %61 = vector.shape_cast %52 : vector<128x1xf32> to vector<128x1xf32>
    %62 = vector.broadcast %61 : vector<128x1xf32> to vector<128x128xf32>
    %63 = arith.select %22, %62, %60 : vector<128x128xi1>, vector<128x128xf32>
    %64 = tpu.reciprocal %63 : vector<128x128xf32> -> vector<128x128xf32>
    %65 = arith.mulf %48, %64 : vector<128x128xf32>
    %66 = arith.ori %22, %27 : vector<128x128xi1>
    %cst_22 = arith.constant 0.000000e+00 : f32
    %67 = vector.broadcast %cst_22 : f32 to vector<128x128xf32>
    %68 = arith.select %32, %20, %67 : vector<128x128xi1>, vector<128x128xf32>
    %69 = arith.select %66, %65, %68 : vector<128x128xi1>, vector<128x128xf32>
    %c0_23 = arith.constant 0 : index
    %c0_24 = arith.constant 0 : index
    %70 = vector.load %arg3[%c0_23, %c0_24] : memref<128x128xf32, #tpu.memory_space<vmem>>, vector<128x128xf32>
    tpu.vector_store %arg3[%c0_23, %c0_24], %69 {strides = array<i32>} : memref<128x128xf32, #tpu.memory_space<vmem>>, vector<128x128xf32>,
    return
  }
  func.func @transform_0(%arg0: i32) -> (i32, i32) {
    %c0_i32 = arith.constant 0 : i32
    %c0_i32_0 = arith.constant 0 : i32
    return %arg0, %c0_i32 : i32, i32
  }
  func.func @transform_1(%arg0: i32) -> (i32, i32) {
    %c0_i32 = arith.constant 0 : i32
    %c0_i32_0 = arith.constant 0 : i32
    %c0_i32_1 = arith.constant 0 : i32
    return %c0_i32, %c0_i32_0 : i32, i32
  }
  func.func @transform_2(%arg0: i32) -> (i32, i32) {
    %c0_i32 = arith.constant 0 : i32
    %c0_i32_0 = arith.constant 0 : i32
    return %arg0, %c0_i32 : i32, i32
  }
}

</mosaic_0001>

<bundles_post_ra>
// kernel: hierarchical_policy_forward.1
= control target key start
LH: loop header
LB: loop body
LE: loop exit
PB: predicated region body
PF: predicated region fallthrough
CT: control target
= control target key end

     0   :  { %s1310_s9 = smov 0   ;;  %s2111_s0 = inlined_call_operand.vmem [shape: f32[256,32], index: 0, kind: input, shape index: {}]   ;;  %s2112_s1 = inlined_call_operand.vmem [shape: f32[296,128], index: 1, kind: input, shape index: {}]   ;;  %s2113_s2 = inlined_call_operand.vmem [shape: f32[256,128], index: 2, kind: output, shape index: {}]  }
   0x1 LB: > { %s1154_s10 = sadd.s32 4294967295, %s1293_s9   ;;  %p1158_p0 = scmp.ge.s32.totalorder %s1293_s9, 1  ;;  %s1293_s9 = sphi %s1310_s9, %s12_s9  }
   0x2   : > { %p113_p1 = scmp.lt.s32.totalorder %s1293_s9, 3 }
   0x4   : > { %p114_p2 = pnand %p1158_p0, %p113_p1 }
   0x5   : > { %s1159_s15 = sshll.u32 (!%p114_p2), %s1154_s10, 4 }
   0x6   : > { %117 = sbr.rel (%p114_p2) target bundleno = 815 (0x32f), region = 28  ;;  %p136_p3 = scmp.lt.s32.totalorder (!%p114_p2), %s1159_s15, 31 }
   0xb   : > { %v166_v0 = vld [vmem:[%s2112_s1 + $0x18] sm:$0xff]  ;;  %v165_v1 = vld [vmem:[%s2112_s1 + $0x10] sm:$0xff]  ;;  %v164_v2 = vld [vmem:[%s2112_s1 + $0x8] sm:$0xff]  ;;  %s2121_s15 = smov (!%p136_p3, %s1159_s15), 31  ;;  %vm201_vm0 = vcmask 261120  }
   0xc   : > { %262 = vmatpush.msra.mxu0 %v166_v0  ;;  %v163_v3 = vld [vmem:[%s2112_s1] sm:$0xff]  ;;  %s1160_s20 = sshll.u32 %s2121_s15, 3  ;;  %v182_v13 = vld [vmem:[%s2112_s1 + $0x98] sm:$0xff]  ;;  %v181_v14 = vld [vmem:[%s2112_s1 + $0x90] sm:$0xff] }
   0xd   : > { %s1338_s23 = scalar_lea.vmem %s2111_s0, %s1160_s20  ;;  %332 = vmatpush.msra.mxu1 %v182_v13  ;;  %1181 = vmatpush.msra.mxu3 %v182_v13  ;;  %v180_v15 = vld [vmem:[%s2112_s1 + $0x88] sm:$0xff]  ;;  %v179_v16 = vld [vmem:[%s2112_s1 + $0x80] sm:$0xff]  ;;  %v178_v18 = vld [vmem:[%s2112_s1 + $0x78] sm:$0xff]  ;;  %s1935_s18 = scalar_lea.vmem %s2113_s2, %s1160_s20 }
   0xe   : > { %263 = vmatpush.msra.mxu0 %v165_v1  ;;  %v147_v4 = vld [vmem:[%s1338_s23] sm:$0xff]  ;;  %v148_v5 = vld [vmem:[%s1338_s23 + $0x8] sm:$0xff]  ;;  %v149_v6 = vld [vmem:[%s1338_s23 + $0x10] sm:$0xff] }
   0xf   : > { %v150_v7 = vld [vmem:[%s1338_s23 + $0x18] sm:$0xff]  ;;  %v151_v8 = vld [vmem:[%s1338_s23 + $0x20] sm:$0xff]  ;;  %v152_v9 = vld [vmem:[%s1338_s23 + $0x28] sm:$0xff]  ;;  %333 = vmatpush.msra.mxu1 %v181_v14  ;;  %1182 = vmatpush.msra.mxu3 %v181_v14 }
  0x10   : > { %264 = vmatpush.msra.mxu0 %v164_v2  ;;  %v153_v10 = vld [vmem:[%s1338_s23 + $0x30] sm:$0xff]  ;;  %v154_v11 = vld [vmem:[%s1338_s23 + $0x38] sm:$0xff]  ;;  %v155_v12 = vld [vmem:[%s1338_s23 + $0x40] sm:$0xff] }
  0x11   : > { %v156_v17 = vld [vmem:[%s1338_s23 + $0x48] sm:$0xff]  ;;  %334 = vmatpush.msra.mxu1 %v180_v15  ;;  %1183 = vmatpush.msra.mxu3 %v180_v15  ;;  %v177_v19 = vld [vmem:[%s2112_s1 + $0x70] sm:$0xff]  ;;  %v175_v21 = vld [vmem:[%s2112_s1 + $0x60] sm:$0xff] }
  0x12   : > { %265 = vmatpush.msra.mxu0 %v163_v3  ;;  %v176_v20 = vld [vmem:[%s2112_s1 + $0x68] sm:$0xff]  ;;  %v157_v22 = vld [vmem:[%s1338_s23 + $0x50] sm:$0xff]  ;;  %v174_v23 = vld [vmem:[%s2112_s1 + $0x58] sm:$0xff] }
  0x13   : > { %1163 = vmatmul.msk.f32.vlgmr.msra.gmra.mxu0 %vm201_vm0, %v147_v4  ;;  %335 = vmatpush.msra.mxu1 %v179_v16  ;;  %v173_v24 = vld [vmem:[%s2112_s1 + $0x50] sm:$0xff]  ;;  %v172_v25 = vld [vmem:[%s2112_s1 + $0x48] sm:$0xff]  ;;  %v171_v26 = vld [vmem:[%s2112_s1 + $0x40] sm:$0xff] }
  0x14   : > { %1184 = vmatpush.msra.mxu3 %v179_v16  ;;  %v158_v27 = vld [vmem:[%s1338_s23 + $0x58] sm:$0xff]  ;;  %v169_v29 = vld [vmem:[%s2112_s1 + $0x30] sm:$0xff]  ;;  %v168_v30 = vld [vmem:[%s2112_s1 + $0x28] sm:$0xff] }
  0x15   : > { %336 = vmatpush.msra.mxu1 %v178_v18  ;;  %v170_v28 = vld [vmem:[%s2112_s1 + $0x38] sm:$0xff]  ;;  %v159_v31 = vld [vmem:[%s1338_s23 + $0x60] sm:$0xff]  ;;  %v160_v33 = vld [vmem:[%s1338_s23 + $0x68] sm:$0xff] }
  0x16   : > { %1185 = vmatpush.msra.mxu3 %v178_v18  ;;  %v167_v32 = vld [vmem:[%s2112_s1 + $0x20] sm:$0xff]  ;;  %v161_v34 = vld [vmem:[%s1338_s23 + $0x70] sm:$0xff]  ;;  %v162_v35 = vld [vmem:[%s1338_s23 + $0x78] sm:$0xff] }
  0x17   : > { %337 = vmatpush.msra.mxu1 %v177_v19  ;;  %v198_v54 = vld [vmem:[%s2112_s1 + $0x118] sm:$0xff]  ;;  %v197_v56 = vld [vmem:[%s2112_s1 + $0x110] sm:$0xff]  ;;  %v196_v58 = vld [vmem:[%s2112_s1 + $0x108] sm:$0xff] }
  0x18   : > { %1186 = vmatpush.msra.mxu3 %v177_v19  ;;  %433 = vmatpush.msra.mxu2 %v198_v54  ;;  %v195_v59 = vld [vmem:[%s2112_s1 + $0x100] sm:$0xff]  ;;  %v194_v60 = vld [vmem:[%s2112_s1 + $0xf8] sm:$0xff]  ;;  %v193_v62 = vld [vmem:[%s2112_s1 + $0xf0] sm:$0xff] }
  0x19   : > { %338 = vmatpush.msra.mxu1 %v176_v20  ;;  %v192_v0 = vld [vmem:[%s2112_s1 + $0xe8] sm:$0xff]  ;;  %v191_v1 = vld [vmem:[%s2112_s1 + $0xe0] sm:$0xff]  ;;  %v190_v2 = vld [vmem:[%s2112_s1 + $0xd8] sm:$0xff] }
  0x1a   : > { %1187 = vmatpush.msra.mxu3 %v176_v20  ;;  %434 = vmatpush.msra.mxu2 %v197_v56  ;;  %v189_v4 = vld [vmem:[%s2112_s1 + $0xd0] sm:$0xff]  ;;  %v183_v13 = vld [vmem:[%s2112_s1 + $0xa0] sm:$0xff]  ;;  %v397_v20 = vlaneseq }
  0x1b   : > { %1164 = vmatmul.msk.f32.gmra.mxu0 %vm201_vm0, %v148_v5  ;;  %339 = vmatpush.msra.mxu1 %v175_v21 }
  0x1c   : > { %1188 = vmatpush.msra.mxu3 %v175_v21  ;;  %435 = vmatpush.msra.mxu2 %v196_v58  ;;  %v1471_v21 = vld [vmem:[%s2112_s1 + $0x120] ss:$0 sm:$0xff] }
  0x1d   : > { %340 = vmatpush.msra.mxu1 %v174_v23 }
  0x1e   : > { %1189 = vmatpush.msra.mxu3 %v174_v23  ;;  %436 = vmatpush.msra.mxu2 %v195_v59 }
  0x1f   : > { %341 = vmatpush.msra.mxu1 %v173_v24 }
  0x20   : > { %1190 = vmatpush.msra.mxu3 %v173_v24  ;;  %437 = vmatpush.msra.mxu2 %v194_v60 }
  0x21   : > { %342 = vmatpush.msra.mxu1 %v172_v25 }
  0x22   : > { %1191 = vmatpush.msra.mxu3 %v172_v25  ;;  %438 = vmatpush.msra.mxu2 %v193_v62 }
  0x23   : > { %1165 = vmatmul.msk.f32.gmra.mxu0 %vm201_vm0, %v149_v6  ;;  %343 = vmatpush.msra.mxu1 %v171_v26  ;;  %v188_v6 = vld [vmem:[%s2112_s1 + $0xc8] sm:$0xff] }
  0x24   : > { %1192 = vmatpush.msra.mxu3 %v171_v26  ;;  %439 = vmatpush.msra.mxu2 %v192_v0 }
  0x25   : > { %344 = vmatpush.msra.mxu1 %v170_v28 }
  0x26   : > { %1193 = vmatpush.msra.mxu3 %v170_v28  ;;  %440 = vmatpush.msra.mxu2 %v191_v1 }
  0x27   : > { %345 = vmatpush.msra.mxu1 %v169_v29 }
  0x28   : > { %1194 = vmatpush.msra.mxu3 %v169_v29  ;;  %441 = vmatpush.msra.mxu2 %v190_v2 }
  0x29   : > { %346 = vmatpush.msra.mxu1 %v168_v30 }
  0x2a   : > { %1195 = vmatpush.msra.mxu3 %v168_v30  ;;  %442 = vmatpush.msra.mxu2 %v189_v4 }
  0x2b   : > { %1166 = vmatmul.msk.f32.gmra.mxu0 %vm201_vm0, %v150_v7  ;;  %347 = vmatpush.msra.mxu1 %v167_v32  ;;  %v187_v7 = vld [vmem:[%s2112_s1 + $0xc0] sm:$0xff] }
  0x2c   : > { %1196 = vmatpush.msra.mxu3 %v167_v32  ;;  %443 = vmatpush.msra.mxu2 %v188_v6 }
  0x2e   : > { %1197 = vmatpush.msrb.mxu3 %v198_v54  ;;  %444 = vmatpush.msra.mxu2 %v187_v7 }
  0x30   : > { %1198 = vmatpush.msrb.mxu3 %v197_v56 }
  0x32   : > { %1199 = vmatpush.msrb.mxu3 %v196_v58 }
  0x33   : > { %1167 = vmatmul.msk.f32.gmra.mxu0 %vm201_vm0, %v151_v8  ;;  %v186_v8 = vld [vmem:[%s2112_s1 + $0xb8] sm:$0xff] }
  0x34   : > { %1200 = vmatpush.msrb.mxu3 %v195_v59  ;;  %445 = vmatpush.msra.mxu2 %v186_v8 }
  0x36   : > { %1201 = vmatpush.msrb.mxu3 %v194_v60 }
  0x38   : > { %1202 = vmatpush.msrb.mxu3 %v193_v62 }
  0x3a   : > { %1203 = vmatpush.msrb.mxu3 %v192_v0 }
  0x3b   : > { %1168 = vmatmul.msk.f32.gmra.mxu0 %vm201_vm0, %v152_v9 }
  0x3c   : > { %1204 = vmatpush.msrb.mxu3 %v191_v1 }
  0x3e   : > { %1205 = vmatpush.msrb.mxu3 %v190_v2 }
  0x40   : > { %1206 = vmatpush.msrb.mxu3 %v189_v4 }
  0x42   : > { %1207 = vmatpush.msrb.mxu3 %v188_v6 }
  0x43   : > { %1169 = vmatmul.msk.f32.gmra.mxu0 %vm201_vm0, %v153_v10  ;;  %v185_v10 = vld [vmem:[%s2112_s1 + $0xb0] sm:$0xff] }
  0x44   : > { %1208 = vmatpush.msrb.mxu3 %v187_v7  ;;  %446 = vmatpush.msra.mxu2 %v185_v10 }
  0x46   : > { %1209 = vmatpush.msrb.mxu3 %v186_v8 }
  0x48   : > { %1210 = vmatpush.msrb.mxu3 %v185_v10 }
  0x4b   : > { %1170 = vmatmul.msk.f32.gmra.mxu0 %vm201_vm0, %v154_v11 }
  0x53   : > { %1171 = vmatmul.msk.f32.gmra.mxu0 %vm201_vm0, %v155_v12  ;;  %v184_v12 = vld [vmem:[%s2112_s1 + $0xa8] sm:$0xff] }
  0x54   : > { %447 = vmatpush.msra.mxu2 %v184_v12  ;;  %1211 = vmatpush.msrb.mxu3 %v184_v12 }
  0x56   : > { %448 = vmatpush.msra.mxu2 %v183_v13  ;;  %1212 = vmatpush.msrb.mxu3 %v183_v13 }
  0x5b   : > { %1172 = vmatmul.msk.f32.gmra.mxu0 %vm201_vm0, %v156_v17 }
  0x63   : > { %1173 = vmatmul.msk.f32.gmra.mxu0 %vm201_vm0, %v157_v22  ;;  %v1473_v22 = vand.u32 127, %v397_v20 }
  0x65   : > { %vm399_vm1 = vcmp.lt.s32.totalorder %v1473_v22, 64  ;;  %vm499_vm2 = vcmp.ge.s32.totalorder %v1473_v22, 8  ;;  %vm500_vm3 = vcmp.lt.s32.totalorder %v1473_v22, 40  ;;  %vm498_vm5 = vcmp.lt.s32.totalorder %v1473_v22, 8 }
  0x66   : > { %vm1531_vm4 = vmand %vm499_vm2, %vm500_vm3  ;;  %vm502_vm7 = vcmp.ge.s32.totalorder %v1473_v22, 40  ;;  %vm503_vm8 = vcmp.lt.s32.totalorder %v1473_v22, 42 }
  0x67   : > { %vm1916_vm11 = vmand %vm502_vm7, %vm503_vm8 }
  0x68   : > { %vm1926_vm13 = vmor %vm498_vm5, %vm1531_vm4 }
  0x6b   : > { %1174 = vmatmul.msk.f32.gmra.mxu0 %vm201_vm0, %v158_v27 }
  0x73   : > { %1175 = vmatmul.msk.f32.gmra.mxu0 %vm201_vm0, %v159_v31 }
  0x7b   : > { %1176 = vmatmul.msk.f32.gmra.mxu0 %vm201_vm0, %v160_v33 }
  0x83   : > { %1177 = vmatmul.msk.f32.gmra.mxu0 %vm201_vm0, %v161_v34 }
  0x8b   : > { %1178 = vmatmul.msk.f32.gmra.mxu0 %vm201_vm0, %v162_v35 }
  0x90   : > { %v267_v36 = vpop.f32.mrf.mxu0 }
  0x91   : > { %v315_v37 = vmax.f32 %v267_v36, 0.0 }
  0x93   : > { %348 = vmatmul.f32.vlgmr.msra.gmra.mxu1 %v315_v37 }
  0x98   : > { %v270_v38 = vpop.f32.mrf.mxu0 }
  0x99   : > { %v316_v39 = vmax.f32 %v270_v38, 0.0 }
  0x9b   : > { %351 = vmatmul.f32.gmra.mxu1 %v316_v39 }
  0xa0   : > { %v273_v40 = vpop.f32.mrf.mxu0 }
  0xa1   : > { %v317_v41 = vmax.f32 %v273_v40, 0.0 }
  0xa3   : > { %354 = vmatmul.f32.gmra.mxu1 %v317_v41 }
  0xa8   : > { %v276_v42 = vpop.f32.mrf.mxu0 }
  0xa9   : > { %v318_v43 = vmax.f32 %v276_v42, 0.0 }
  0xab   : > { %357 = vmatmul.f32.gmra.mxu1 %v318_v43 }
  0xb0   : > { %v279_v44 = vpop.f32.mrf.mxu0 }
  0xb1   : > { %v319_v45 = vmax.f32 %v279_v44, 0.0 }
  0xb3   : > { %360 = vmatmul.f32.gmra.mxu1 %v319_v45 }
  0xb8   : > { %v282_v46 = vpop.f32.mrf.mxu0 }
  0xb9   : > { %v320_v47 = vmax.f32 %v282_v46, 0.0 }
  0xbb   : > { %363 = vmatmul.f32.gmra.mxu1 %v320_v47 }
  0xc0   : > { %v285_v48 = vpop.f32.mrf.mxu0 }
  0xc1   : > { %v321_v49 = vmax.f32 %v285_v48, 0.0 }
  0xc3   : > { %366 = vmatmul.f32.gmra.mxu1 %v321_v49 }
  0xc8   : > { %v288_v50 = vpop.f32.mrf.mxu0 }
  0xc9   : > { %v322_v51 = vmax.f32 %v288_v50, 0.0 }
  0xcb   : > { %369 = vmatmul.f32.gmra.mxu1 %v322_v51 }
  0xd0   : > { %v291_v52 = vpop.f32.mrf.mxu0 }
  0xd1   : > { %v323_v53 = vmax.f32 %v291_v52, 0.0 }
  0xd3   : > { %372 = vmatmul.f32.gmra.mxu1 %v323_v53 }
  0xd8   : > { %v294_v55 = vpop.f32.mrf.mxu0 }
  0xd9   : > { %v324_v57 = vmax.f32 %v294_v55, 0.0 }
  0xdb   : > { %375 = vmatmul.f32.gmra.mxu1 %v324_v57 }
  0xe0   : > { %v297_v61 = vpop.f32.mrf.mxu0 }
  0xe1   : > { %v325_v63 = vmax.f32 %v297_v61, 0.0 }
  0xe3   : > { %378 = vmatmul.f32.gmra.mxu1 %v325_v63 }
  0xe8   : > { %v300_v3 = vpop.f32.mrf.mxu0 }
  0xe9   : > { %v326_v5 = vmax.f32 %v300_v3, 0.0 }
  0xeb   : > { %381 = vmatmul.f32.gmra.mxu1 %v326_v5 }
  0xf0   : > { %v303_v9 = vpop.f32.mrf.mxu0 }
  0xf1   : > { %v327_v11 = vmax.f32 %v303_v9, 0.0 }
  0xf3   : > { %384 = vmatmul.f32.vlgmr.msra.gmra.mxu3 %v327_v11 }
  0xf8   : > { %v306_v14 = vpop.f32.mrf.mxu0 }
  0xf9   : > { %v328_v15 = vmax.f32 %v306_v14, 0.0 }
  0xfb   : > { %387 = vmatmul.f32.gmra.mxu3 %v328_v15 }
 0x100   : > { %v309_v16 = vpop.f32.mrf.mxu0 }
 0x101   : > { %v329_v17 = vmax.f32 %v309_v16, 0.0 }
 0x103   : > { %390 = vmatmul.f32.gmra.mxu3 %v329_v17 }
 0x108   : > { %v312_v18 = vpop.f32.mrf.mxu0 }
 0x109   : > { %v330_v19 = vmax.f32 %v312_v18, 0.0 }
 0x10b   : > { %393 = vmatmul.f32.gmra.mxu3 %v330_v19 }
 0x110   : > { %v349_v23 = vpop.f32.mrf.mxu1 }
 0x111   : > { %v350_v24 = vadd.f32 %v1471_v21, %v349_v23 }
 0x113   : > { %v400_v25 = vmax.f32 %v350_v24, 0.0 }
 0x115   : > { %v416_v26 = vsel %vm399_vm1, %v400_v25, %v350_v24  ;;  %v1527_v25 = vld [vmem:[%s2112_s1 + $0x121] ss:$0 sm:$0xff] }
 0x116   : > { %449 = vmatmul.f32.vlgmr.msra.gmra.mxu2 %v416_v26 }
 0x118   : > { %v352_v27 = vpop.f32.mrf.mxu1 }
 0x119   : > { %v353_v28 = vadd.f32 %v1471_v21, %v352_v27 }
 0x11b   : > { %v401_v29 = vmax.f32 %v353_v28, 0.0 }
 0x11d   : > { %v417_v30 = vsel %vm399_vm1, %v401_v29, %v353_v28 }
 0x11e   : > { %452 = vmatmul.f32.gmra.mxu2 %v417_v30 }
 0x120   : > { %v355_v31 = vpop.f32.mrf.mxu1 }
 0x121   : > { %v356_v32 = vadd.f32 %v1471_v21, %v355_v31 }
 0x123   : > { %v402_v33 = vmax.f32 %v356_v32, 0.0 }
 0x125   : > { %v418_v34 = vsel %vm399_vm1, %v402_v33, %v356_v32 }
 0x126   : > { %455 = vmatmul.f32.gmra.mxu2 %v418_v34 }
 0x128   : > { %v358_v35 = vpop.f32.mrf.mxu1 }
 0x129   : > { %v359_v36 = vadd.f32 %v1471_v21, %v358_v35 }
 0x12b   : > { %v403_v37 = vmax.f32 %v359_v36, 0.0 }
 0x12d   : > { %v419_v38 = vsel %vm399_vm1, %v403_v37, %v359_v36 }
 0x12e   : > { %458 = vmatmul.f32.gmra.mxu2 %v419_v38 }
 0x130   : > { %v361_v39 = vpop.f32.mrf.mxu1 }
 0x131   : > { %v362_v40 = vadd.f32 %v1471_v21, %v361_v39 }
 0x133   : > { %v404_v41 = vmax.f32 %v362_v40, 0.0 }
 0x135   : > { %v420_v42 = vsel %vm399_vm1, %v404_v41, %v362_v40 }
 0x136   : > { %461 = vmatmul.f32.gmra.mxu2 %v420_v42 }
 0x138   : > { %v364_v43 = vpop.f32.mrf.mxu1 }
 0x139   : > { %v365_v44 = vadd.f32 %v1471_v21, %v364_v43 }
 0x13b   : > { %v405_v45 = vmax.f32 %v365_v44, 0.0 }
 0x13d   : > { %v421_v46 = vsel %vm399_vm1, %v405_v45, %v365_v44 }
 0x13e   : > { %464 = vmatmul.f32.gmra.mxu2 %v421_v46 }
 0x140   : > { %v367_v47 = vpop.f32.mrf.mxu1 }
 0x141   : > { %v368_v48 = vadd.f32 %v1471_v21, %v367_v47 }
 0x143   : > { %v406_v49 = vmax.f32 %v368_v48, 0.0 }
 0x145   : > { %v422_v50 = vsel %vm399_vm1, %v406_v49, %v368_v48 }
 0x146   : > { %467 = vmatmul.f32.gmra.mxu2 %v422_v50 }
 0x148   : > { %v370_v51 = vpop.f32.mrf.mxu1 }
 0x149   : > { %v371_v52 = vadd.f32 %v1471_v21, %v370_v51 }
 0x14b   : > { %v407_v53 = vmax.f32 %v371_v52, 0.0 }
 0x14d   : > { %v423_v54 = vsel %vm399_vm1, %v407_v53, %v371_v52 }
 0x14e   : > { %470 = vmatmul.f32.gmra.mxu2 %v423_v54 }
 0x150   : > { %v373_v55 = vpop.f32.mrf.mxu1 }
 0x151   : > { %v374_v56 = vadd.f32 %v1471_v21, %v373_v55 }
 0x153   : > { %v408_v57 = vmax.f32 %v374_v56, 0.0 }
 0x155   : > { %v424_v58 = vsel %vm399_vm1, %v408_v57, %v374_v56 }
 0x156   : > { %473 = vmatmul.f32.gmra.mxu2 %v424_v58 }
 0x158   : > { %v376_v59 = vpop.f32.mrf.mxu1 }
 0x159   : > { %v377_v60 = vadd.f32 %v1471_v21, %v376_v59 }
 0x15b   : > { %v409_v61 = vmax.f32 %v377_v60, 0.0 }
 0x15d   : > { %v425_v62 = vsel %vm399_vm1, %v409_v61, %v377_v60 }
 0x15e   : > { %476 = vmatmul.f32.gmra.mxu2 %v425_v62 }
 0x160   : > { %v379_v63 = vpop.f32.mrf.mxu1 }
 0x161   : > { %v380_v0 = vadd.f32 %v1471_v21, %v379_v63 }
 0x163   : > { %v410_v1 = vmax.f32 %v380_v0, 0.0 }
 0x165   : > { %v426_v2 = vsel %vm399_vm1, %v410_v1, %v380_v0 }
 0x166   : > { %479 = vmatmul.f32.gmra.mxu2 %v426_v2 }
 0x168   : > { %v382_v3 = vpop.f32.mrf.mxu1 }
 0x169   : > { %v383_v4 = vadd.f32 %v1471_v21, %v382_v3 }
 0x16b   : > { %v411_v5 = vmax.f32 %v383_v4, 0.0 }
 0x16d   : > { %v427_v6 = vsel %vm399_vm1, %v411_v5, %v383_v4 }
 0x16e   : > { %482 = vmatmul.f32.gmra.mxu2 %v427_v6 }
 0x176   : > { %v385_v7 = vpop.f32.mrf.mxu3 }
 0x177   : > { %v386_v8 = vadd.f32 %v1471_v21, %v385_v7 }
 0x179   : > { %v412_v9 = vmax.f32 %v386_v8, 0.0 }
 0x17b   : > { %v428_v10 = vsel %vm399_vm1, %v412_v9, %v386_v8 }
 0x17c   : > { %485 = vmatmul.f32.vlgmr.msrb.gmra.mxu3 %v428_v10 }
 0x17e   : > { %v388_v11 = vpop.f32.mrf.mxu3 }
 0x17f   : > { %v389_v12 = vadd.f32 %v1471_v21, %v388_v11 }
 0x181   : > { %v413_v13 = vmax.f32 %v389_v12, 0.0 }
 0x183   : > { %v429_v14 = vsel %vm399_vm1, %v413_v13, %v389_v12 }
 0x184   : > { %488 = vmatmul.f32.gmra.mxu3 %v429_v14 }
 0x186   : > { %v391_v15 = vpop.f32.mrf.mxu3 }
 0x187   : > { %v392_v16 = vadd.f32 %v1471_v21, %v391_v15 }
 0x189   : > { %v414_v17 = vmax.f32 %v392_v16, 0.0 }
 0x18b   : > { %v430_v18 = vsel %vm399_vm1, %v414_v17, %v392_v16 }
 0x18c   : > { %491 = vmatmul.f32.gmra.mxu3 %v430_v18 }
 0x18e   : > { %v394_v19 = vpop.f32.mrf.mxu3 }
 0x18f   : > { %v395_v20 = vadd.f32 %v1471_v21, %v394_v19 }
 0x191   : > { %v415_v23 = vmax.f32 %v395_v20, 0.0 }
 0x193   : > { %v431_v24 = vsel %vm399_vm1, %v415_v23, %v395_v20 }
 0x194   : > { %494 = vmatmul.f32.gmra.mxu3 %v431_v24 }
 0x199   : > { %v450_v26 = vpop.f32.mrf.mxu2 }
 0x19a   : > { %v1537_v21 = vadd.f32 %v1527_v25, %v450_v26 }
 0x19c   : > { %v553_v28 = vsel %vm1531_vm4, %v1537_v21, -inf  ;;  %v505_v29 = vsel %vm498_vm5, %v1537_v21, -inf }
 0x19d   : > { %569 = vmax.xlane.f32.xlu1 %v553_v28  ;;  %521 = vmax.xlane.f32.xlu0 %v505_v29 }
 0x1a1   : > { %v453_v30 = vpop.f32.mrf.mxu2 }
 0x1a2   : > { %v1546_v31 = vadd.f32 %v1527_v25, %v453_v30 }
 0x1a4   : > { %v554_v32 = vsel %vm1531_vm4, %v1546_v31, -inf  ;;  %v506_v33 = vsel %vm498_vm5, %v1546_v31, -inf }
 0x1a5   : > { %571 = vmax.xlane.f32.xlu2 %v554_v32  ;;  %523 = vmax.xlane.f32.xlu0 %v506_v33 }
 0x1a9   : > { %v456_v34 = vpop.f32.mrf.mxu2 }
 0x1aa   : > { %v1555_v35 = vadd.f32 %v1527_v25, %v456_v34 }
 0x1ac   : > { %v555_v36 = vsel %vm1531_vm4, %v1555_v35, -inf  ;;  %v507_v37 = vsel %vm498_vm5, %v1555_v35, -inf }
 0x1ad   : > { %573 = vmax.xlane.f32.xlu0 %v555_v36  ;;  %525 = vmax.xlane.f32.xlu1 %v507_v37 }
 0x1b1   : > { %v459_v38 = vpop.f32.mrf.mxu2 }
 0x1b2   : > { %v1564_v39 = vadd.f32 %v1527_v25, %v459_v38 }
 0x1b4   : > { %v508_v40 = vsel %vm498_vm5, %v1564_v39, -inf  ;;  %v556_v43 = vsel %vm1531_vm4, %v1564_v39, -inf }
 0x1b5   : > { %527 = vmax.xlane.f32.xlu1 %v508_v40 }
 0x1b9   : > { %v462_v41 = vpop.f32.mrf.mxu2 }
 0x1ba   : > { %v1570_v42 = vadd.f32 %v1527_v25, %v462_v41 }
 0x1bc   : > { %v509_v44 = vsel %vm498_vm5, %v1570_v42, -inf  ;;  %v557_v47 = vsel %vm1531_vm4, %v1570_v42, -inf }
 0x1bd   : > { %575 = vmax.xlane.f32.xlu1 %v556_v43  ;;  %529 = vmax.xlane.f32.xlu2 %v509_v44 }
 0x1c1   : > { %v465_v45 = vpop.f32.mrf.mxu2 }
 0x1c2   : > { %v1579_v46 = vadd.f32 %v1527_v25, %v465_v45 }
 0x1c4   : > { %v558_v48 = vsel %vm1531_vm4, %v1579_v46, -inf  ;;  %v510_v51 = vsel %vm498_vm5, %v1579_v46, -inf }
 0x1c5   : > { %577 = vmax.xlane.f32.xlu2 %v557_v47  ;;  %579 = vmax.xlane.f32.xlu0 %v558_v48 }
 0x1c9   : > { %v468_v49 = vpop.f32.mrf.mxu2 }
 0x1ca   : > { %v1588_v50 = vadd.f32 %v1527_v25, %v468_v49 }
 0x1cc   : > { %v559_v52 = vsel %vm1531_vm4, %v1588_v50, -inf  ;;  %v511_v53 = vsel %vm498_vm5, %v1588_v50, -inf }
 0x1cd   : > { %531 = vmax.xlane.f32.xlu2 %v510_v51  ;;  %581 = vmax.xlane.f32.xlu1 %v559_v52 }
 0x1ce   : > { %533 = vmax.xlane.f32.xlu0 %v511_v53 }
 0x1d1   : > { %v471_v54 = vpop.f32.mrf.mxu2 }
 0x1d2   : > { %v1600_v55 = vadd.f32 %v1527_v25, %v471_v54 }
 0x1d4   : > { %v560_v56 = vsel %vm1531_vm4, %v1600_v55, -inf  ;;  %v512_v57 = vsel %vm498_vm5, %v1600_v55, -inf }
 0x1d5   : > { %583 = vmax.xlane.f32.xlu2 %v560_v56  ;;  %535 = vmax.xlane.f32.xlu1 %v512_v57 }
 0x1d9   : > { %v474_v58 = vpop.f32.mrf.mxu2 }
 0x1da   : > { %v1609_v59 = vadd.f32 %v1527_v25, %v474_v58 }
 0x1dc   : > { %v561_v60 = vsel %vm1531_vm4, %v1609_v59, -inf  ;;  %v513_v61 = vsel %vm498_vm5, %v1609_v59, -inf }
 0x1dd   : > { %585 = vmax.xlane.f32.xlu0 %v561_v60  ;;  %537 = vmax.xlane.f32.xlu2 %v513_v61 }
 0x1e1   : > { %v477_v62 = vpop.f32.mrf.mxu2 }
 0x1e2   : > { %v1618_v63 = vadd.f32 %v1527_v25, %v477_v62 }
 0x1e4   : > { %v562_v0 = vsel %vm1531_vm4, %v1618_v63, -inf  ;;  %v514_v1 = vsel %vm498_vm5, %v1618_v63, -inf }
 0x1e5   : > { %587 = vmax.xlane.f32.xlu1 %v562_v0  ;;  %539 = vmax.xlane.f32.xlu0 %v514_v1 }
 0x1e9   : > { %v480_v2 = vpop.f32.mrf.mxu2 }
 0x1ea   : > { %v1627_v3 = vadd.f32 %v1527_v25, %v480_v2 }
 0x1ec   : > { %v563_v4 = vsel %vm1531_vm4, %v1627_v3, -inf  ;;  %v515_v5 = vsel %vm498_vm5, %v1627_v3, -inf }
 0x1ed   : > { %589 = vmax.xlane.f32.xlu2 %v563_v4  ;;  %541 = vmax.xlane.f32.xlu1 %v515_v5 }
 0x1f1   : > { %v483_v6 = vpop.f32.mrf.mxu2 }
 0x1f2   : > { %v1636_v7 = vadd.f32 %v1527_v25, %v483_v6 }
 0x1f4   : > { %v564_v8 = vsel %vm1531_vm4, %v1636_v7, -inf  ;;  %v516_v9 = vsel %vm498_vm5, %v1636_v7, -inf }
 0x1f5   : > { %591 = vmax.xlane.f32.xlu0 %v564_v8  ;;  %543 = vmax.xlane.f32.xlu2 %v516_v9 }
 0x1ff   : > { %v486_v10 = vpop.f32.mrf.mxu3 }
 0x200   : > { %v1645_v11 = vadd.f32 %v1527_v25, %v486_v10 }
 0x202   : > { %v565_v12 = vsel %vm1531_vm4, %v1645_v11, -inf  ;;  %v517_v13 = vsel %vm498_vm5, %v1645_v11, -inf }
 0x203   : > { %593 = vmax.xlane.f32.xlu1 %v565_v12  ;;  %545 = vmax.xlane.f32.xlu0 %v517_v13 }
 0x207   : > { %v489_v14 = vpop.f32.mrf.mxu3 }
 0x208   : > { %v1654_v15 = vadd.f32 %v1527_v25, %v489_v14 }
 0x20a   : > { %v566_v16 = vsel %vm1531_vm4, %v1654_v15, -inf  ;;  %v518_v17 = vsel %vm498_vm5, %v1654_v15, -inf }
 0x20b   : > { %595 = vmax.xlane.f32.xlu2 %v566_v16  ;;  %547 = vmax.xlane.f32.xlu1 %v518_v17 }
 0x20f   : > { %v492_v18 = vpop.f32.mrf.mxu3 }
 0x210   : > { %v1663_v19 = vadd.f32 %v1527_v25, %v492_v18  ;;  %v570_v20 = vpop.xlane.xlu1 %569  ;;  %v522_v23 = vpop.xlane.xlu0 %521 }
 0x211   : > { %v601_v24 = vsel %vm1531_vm4, %v570_v20, %v1537_v21 }
 0x212   : > { %v617_v26 = vsel %vm498_vm5, %v522_v23, %v601_v24  ;;  %v519_v28 = vsel %vm498_vm5, %v1663_v19, -inf  ;;  %v567_v29 = vsel %vm1531_vm4, %v1663_v19, -inf }
 0x213   : > { %v633_v30 = vsub.f32 %v1537_v21, %v617_v26  ;;  %549 = vmax.xlane.f32.xlu2 %v519_v28  ;;  %597 = vmax.xlane.f32.xlu0 %v567_v29 }
 0x215   : > { %v649_v32 = vmul.f32 1.442695, %v633_v30 }
 0x217   : > { %1223 = vpow2.f32 %v649_v32  ;;  %v495_v33 = vpop.f32.mrf.mxu3 }
 0x218   : > { %v1678_v34 = vadd.f32 %v1527_v25, %v495_v33  ;;  %v572_v36 = vpop.xlane.xlu2 %571  ;;  %v524_v37 = vpop.xlane.xlu0 %523 }
 0x219   : > { %v602_v38 = vsel %vm1531_vm4, %v572_v36, %v1546_v31 }
 0x21a   : > { %v618_v40 = vsel %vm498_vm5, %v524_v37, %v602_v38  ;;  %v568_v41 = vsel %vm1531_vm4, %v1678_v34, -inf  ;;  %v520_v43 = vsel %vm498_vm5, %v1678_v34, -inf }
 0x21b   : > { %v634_v25 = vsub.f32 %v1546_v31, %v618_v40  ;;  %599 = vmax.xlane.f32.xlu1 %v568_v41  ;;  %551 = vmax.xlane.f32.xlu0 %v520_v43 }
 0x21d   : > { %v1692_v44 = vpop.eup %1223  ;;  %v651_v45 = vmul.f32 1.442695, %v634_v25 }
 0x21e   : > { %v681_v47 = vsel %vm498_vm5, %v1692_v44, 0.0  ;;  %v729_v57 = vsel %vm1531_vm4, %v1692_v44, 0.0 }
 0x21f   : > { %1225 = vpow2.f32 %v651_v45  ;;  %697 = vadd.xlane.f32.xlu2 %v681_v47 }
 0x220   : > { %v574_v48 = vpop.xlane.xlu0 %573  ;;  %v526_v49 = vpop.xlane.xlu1 %525 }
 0x221   : > { %v603_v51 = vsel %vm1531_vm4, %v574_v48, %v1555_v35 }
 0x222   : > { %v619_v52 = vsel %vm498_vm5, %v526_v49, %v603_v51 }
 0x223   : > { %v635_v53 = vsub.f32 %v1555_v35, %v619_v52 }
 0x225   : > { %v1703_v54 = vpop.eup %1225  ;;  %v653_v56 = vmul.f32 1.442695, %v635_v53 }
 0x226   : > { %v682_v58 = vsel %vm498_vm5, %v1703_v54, 0.0  ;;  %v730_v0 = vsel %vm1531_vm4, %v1703_v54, 0.0 }
 0x227   : > { %1227 = vpow2.f32 %v653_v56  ;;  %745 = vadd.xlane.f32.xlu2 %v729_v57  ;;  %699 = vadd.xlane.f32.xlu0 %v682_v58 }
 0x228   : > { %v528_v60 = vpop.xlane.xlu1 %527 }
 0x22d   : > { %v1711_v61 = vpop.eup %1227 }
 0x22e   : > { %v683_v62 = vsel %vm498_vm5, %v1711_v61, 0.0  ;;  %v731_v9 = vsel %vm1531_vm4, %v1711_v61, 0.0 }
 0x22f   : > { %701 = vadd.xlane.f32.xlu1 %v683_v62  ;;  %747 = vadd.xlane.f32.xlu0 %v730_v0 }
 0x230   : > { %v576_v1 = vpop.xlane.xlu1 %575  ;;  %v530_v2 = vpop.xlane.xlu2 %529 }
 0x231   : > { %v604_v4 = vsel %vm1531_vm4, %v576_v1, %v1564_v39 }
 0x232   : > { %v620_v5 = vsel %vm498_vm5, %v528_v60, %v604_v4 }
 0x233   : > { %v636_v6 = vsub.f32 %v1564_v39, %v620_v5 }
 0x235   : > { %v655_v8 = vmul.f32 1.442695, %v636_v6 }
 0x237   : > { %1229 = vpow2.f32 %v655_v8  ;;  %749 = vadd.xlane.f32.xlu1 %v731_v9 }
 0x238   : > { %v578_v10 = vpop.xlane.xlu2 %577  ;;  %v580_v12 = vpop.xlane.xlu0 %579 }
 0x239   : > { %v605_v13 = vsel %vm1531_vm4, %v578_v10, %v1570_v42  ;;  %v606_v23 = vsel %vm1531_vm4, %v580_v12, %v1579_v46 }
 0x23a   : > { %v621_v14 = vsel %vm498_vm5, %v530_v2, %v605_v13 }
 0x23b   : > { %v637_v16 = vsub.f32 %v1570_v42, %v621_v14 }
 0x23d   : > { %v1734_v17 = vpop.eup %1229  ;;  %v657_v18 = vmul.f32 1.442695, %v637_v16 }
 0x23e   : > { %v684_v20 = vsel %vm498_vm5, %v1734_v17, 0.0  ;;  %v732_v41 = vsel %vm1531_vm4, %v1734_v17, 0.0 }
 0x23f   : > { %1231 = vpow2.f32 %v657_v18  ;;  %703 = vadd.xlane.f32.xlu2 %v684_v20 }
 0x240   : > { %v532_v24 = vpop.xlane.xlu2 %531  ;;  %v582_v26 = vpop.xlane.xlu1 %581 }
 0x241   : > { %v622_v28 = vsel %vm498_vm5, %v532_v24, %v606_v23  ;;  %v607_v29 = vsel %vm1531_vm4, %v582_v26, %v1588_v50  ;;  %v534_v30 = vpop.xlane.xlu0 %533 }
 0x242   : > { %v638_v32 = vsub.f32 %v1579_v46, %v622_v28  ;;  %v623_v33 = vsel %vm498_vm5, %v534_v30, %v607_v29 }
 0x243   : > { %v639_v36 = vsub.f32 %v1588_v50, %v623_v33 }
 0x244   : > { %v659_v37 = vmul.f32 1.442695, %v638_v32 }
 0x245   : > { %v1751_v38 = vpop.eup %1231  ;;  %v661_v40 = vmul.f32 1.442695, %v639_v36 }
 0x246   : > { %1233 = vpow2.f32 %v659_v37  ;;  %v685_v43 = vsel %vm498_vm5, %v1751_v38, 0.0  ;;  %v733_v58 = vsel %vm1531_vm4, %v1751_v38, 0.0 }
 0x247   : > { %1235 = vpow2.f32 %v661_v40  ;;  %751 = vadd.xlane.f32.xlu2 %v732_v41  ;;  %705 = vadd.xlane.f32.xlu0 %v685_v43 }
 0x248   : > { %v584_v25 = vpop.xlane.xlu2 %583  ;;  %v536_v45 = vpop.xlane.xlu1 %535 }
 0x249   : > { %v608_v47 = vsel %vm1531_vm4, %v584_v25, %v1600_v55 }
 0x24a   : > { %v624_v48 = vsel %vm498_vm5, %v536_v45, %v608_v47 }
 0x24b   : > { %v640_v49 = vsub.f32 %v1600_v55, %v624_v48 }
 0x24c   : > { %v1765_v51 = vpop.eup %1233 }
 0x24d   : > { %v1767_v52 = vpop.eup %1235  ;;  %v663_v53 = vmul.f32 1.442695, %v640_v49  ;;  %v686_v56 = vsel %vm498_vm5, %v1765_v51, 0.0  ;;  %v734_v6 = vsel %vm1531_vm4, %v1765_v51, 0.0 }
 0x24e   : > { %707 = vadd.xlane.f32.xlu1 %v686_v56  ;;  %v687_v57 = vsel %vm498_vm5, %v1767_v52, 0.0  ;;  %v735_v8 = vsel %vm1531_vm4, %v1767_v52, 0.0 }
 0x24f   : > { %1237 = vpow2.f32 %v663_v53  ;;  %709 = vadd.xlane.f32.xlu2 %v687_v57  ;;  %753 = vadd.xlane.f32.xlu0 %v733_v58 }
 0x250   : > { %v586_v60 = vpop.xlane.xlu0 %585  ;;  %v538_v62 = vpop.xlane.xlu2 %537 }
 0x251   : > { %v609_v0 = vsel %vm1531_vm4, %v586_v60, %v1609_v59 }
 0x252   : > { %v625_v1 = vsel %vm498_vm5, %v538_v62, %v609_v0 }
 0x253   : > { %v641_v2 = vsub.f32 %v1609_v59, %v625_v1 }
 0x255   : > { %v1784_v4 = vpop.eup %1237  ;;  %v665_v5 = vmul.f32 1.442695, %v641_v2 }
 0x256   : > { %755 = vadd.xlane.f32.xlu1 %v734_v6  ;;  %v688_v9 = vsel %vm498_vm5, %v1784_v4, 0.0  ;;  %v736_v24 = vsel %vm1531_vm4, %v1784_v4, 0.0 }
 0x257   : > { %1239 = vpow2.f32 %v665_v5  ;;  %757 = vadd.xlane.f32.xlu2 %v735_v8  ;;  %711 = vadd.xlane.f32.xlu0 %v688_v9 }
 0x258   : > { %v588_v10 = vpop.xlane.xlu1 %587  ;;  %v540_v12 = vpop.xlane.xlu0 %539 }
 0x259   : > { %v610_v13 = vsel %vm1531_vm4, %v588_v10, %v1618_v63 }
 0x25a   : > { %v626_v14 = vsel %vm498_vm5, %v540_v12, %v610_v13 }
 0x25b   : > { %v642_v16 = vsub.f32 %v1618_v63, %v626_v14 }
 0x25d   : > { %v1801_v18 = vpop.eup %1239  ;;  %v667_v20 = vmul.f32 1.442695, %v642_v16 }
 0x25e   : > { %v689_v23 = vsel %vm498_vm5, %v1801_v18, 0.0  ;;  %v737_v40 = vsel %vm1531_vm4, %v1801_v18, 0.0 }
 0x25f   : > { %1241 = vpow2.f32 %v667_v20  ;;  %713 = vadd.xlane.f32.xlu1 %v689_v23  ;;  %759 = vadd.xlane.f32.xlu0 %v736_v24 }
 0x260   : > { %v590_v26 = vpop.xlane.xlu2 %589  ;;  %v542_v28 = vpop.xlane.xlu1 %541 }
 0x261   : > { %v611_v29 = vsel %vm1531_vm4, %v590_v26, %v1627_v3 }
 0x262   : > { %v627_v30 = vsel %vm498_vm5, %v542_v28, %v611_v29 }
 0x263   : > { %v643_v32 = vsub.f32 %v1627_v3, %v627_v30 }
 0x265   : > { %v1815_v33 = vpop.eup %1241  ;;  %v669_v36 = vmul.f32 1.442695, %v643_v32 }
 0x266   : > { %v690_v37 = vsel %vm498_vm5, %v1815_v33, 0.0  ;;  %v738_v53 = vsel %vm1531_vm4, %v1815_v33, 0.0 }
 0x267   : > { %1243 = vpow2.f32 %v669_v36  ;;  %715 = vadd.xlane.f32.xlu2 %v690_v37  ;;  %761 = vadd.xlane.f32.xlu1 %v737_v40 }
 0x268   : > { %v592_v41 = vpop.xlane.xlu0 %591  ;;  %v544_v43 = vpop.xlane.xlu2 %543 }
 0x269   : > { %v612_v25 = vsel %vm1531_vm4, %v592_v41, %v1636_v7 }
 0x26a   : > { %v628_v45 = vsel %vm498_vm5, %v544_v43, %v612_v25 }
 0x26b   : > { %v644_v47 = vsub.f32 %v1636_v7, %v628_v45 }
 0x26d   : > { %v1829_v48 = vpop.eup %1243  ;;  %v671_v49 = vmul.f32 1.442695, %v644_v47 }
 0x26e   : > { %v691_v56 = vsel %vm498_vm5, %v1829_v48, 0.0  ;;  %v739_v0 = vsel %vm1531_vm4, %v1829_v48, 0.0 }
 0x26f   : > { %1245 = vpow2.f32 %v671_v49  ;;  %763 = vadd.xlane.f32.xlu2 %v738_v53  ;;  %717 = vadd.xlane.f32.xlu0 %v691_v56 }
 0x275   : > { %v1837_v57 = vpop.eup %1245 }
 0x276   : > { %v594_v58 = vpop.xlane.xlu1 %593  ;;  %v546_v60 = vpop.xlane.xlu0 %545  ;;  %v692_v62 = vsel %vm498_vm5, %v1837_v57, 0.0  ;;  %v740_v10 = vsel %vm1531_vm4, %v1837_v57, 0.0 }
 0x277   : > { %v613_v1 = vsel %vm1531_vm4, %v594_v58, %v1645_v11  ;;  %719 = vadd.xlane.f32.xlu1 %v692_v62  ;;  %765 = vadd.xlane.f32.xlu0 %v739_v0 }
 0x278   : > { %v629_v2 = vsel %vm498_vm5, %v546_v60, %v613_v1 }
 0x279   : > { %v645_v5 = vsub.f32 %v1645_v11, %v629_v2 }
 0x27b   : > { %v673_v6 = vmul.f32 1.442695, %v645_v5 }
 0x27d   : > { %1247 = vpow2.f32 %v673_v6 }
 0x27e   : > { %v596_v8 = vpop.xlane.xlu2 %595  ;;  %v548_v9 = vpop.xlane.xlu1 %547 }
 0x27f   : > { %v614_v12 = vsel %vm1531_vm4, %v596_v8, %v1654_v15  ;;  %767 = vadd.xlane.f32.xlu1 %v740_v10 }
 0x280   : > { %v630_v13 = vsel %vm498_vm5, %v548_v9, %v614_v12 }
 0x281   : > { %v646_v14 = vsub.f32 %v1654_v15, %v630_v13 }
 0x283   : > { %v1860_v16 = vpop.eup %1247  ;;  %v675_v20 = vmul.f32 1.442695, %v646_v14 }
 0x284   : > { %v741_v23 = vsel %vm1531_vm4, %v1860_v16, 0.0  ;;  %v693_v24 = vsel %vm498_vm5, %v1860_v16, 0.0 }
 0x285   : > { %1249 = vpow2.f32 %v675_v20  ;;  %769 = vadd.xlane.f32.xlu2 %v741_v23  ;;  %721 = vadd.xlane.f32.xlu0 %v693_v24 }
 0x286   : > { %v550_v26 = vpop.xlane.xlu2 %549  ;;  %v598_v28 = vpop.xlane.xlu0 %597 }
 0x287   : > { %v615_v29 = vsel %vm1531_vm4, %v598_v28, %v1663_v19 }
 0x288   : > { %v631_v30 = vsel %vm498_vm5, %v550_v26, %v615_v29 }
 0x289   : > { %v647_v32 = vsub.f32 %v1663_v19, %v631_v30 }
 0x28b   : > { %v1874_v36 = vpop.eup %1249  ;;  %v677_v37 = vmul.f32 1.442695, %v647_v32 }
 0x28c   : > { %v742_v40 = vsel %vm1531_vm4, %v1874_v36, 0.0  ;;  %v694_v5 = vsel %vm498_vm5, %v1874_v36, 0.0 }
 0x28d   : > { %1251 = vpow2.f32 %v677_v37  ;;  %771 = vadd.xlane.f32.xlu0 %v742_v40 }
 0x28e   : > { %v600_v41 = vpop.xlane.xlu1 %599  ;;  %v552_v43 = vpop.xlane.xlu0 %551 }
 0x28f   : > { %v616_v25 = vsel %vm1531_vm4, %v600_v41, %v1678_v34 }
 0x290   : > { %v632_v45 = vsel %vm498_vm5, %v552_v43, %v616_v25 }
 0x291   : > { %v648_v47 = vsub.f32 %v1678_v34, %v632_v45 }
 0x292   : > { %v698_v49 = vpop.xlane.xlu2 %697 }
 0x293   : > { %v1885_v53 = vpop.eup %1251  ;;  %v679_v56 = vmul.f32 1.442695, %v648_v47 }
 0x294   : > { %v743_v58 = vsel %vm1531_vm4, %v1885_v53, 0.0  ;;  %v695_v23 = vsel %vm498_vm5, %v1885_v53, 0.0 }
 0x295   : > { %1253 = vpow2.f32 %v679_v56  ;;  %773 = vadd.xlane.f32.xlu1 %v743_v58 }
 0x29a   : > { %v746_v60 = vpop.xlane.xlu2 %745  ;;  %v700_v62 = vpop.xlane.xlu0 %699 }
 0x29b   : > { %v1890_v0 = vpop.eup %1253  ;;  %v777_v1 = vsel %vm1531_vm4, %v746_v60, 1.0 }
 0x29c   : > { %v793_v2 = vsel %vm498_vm5, %v698_v49, %v777_v1  ;;  %v744_v6 = vsel %vm1531_vm4, %v1890_v0, 0.0  ;;  %v696_v8 = vsel %vm498_vm5, %v1890_v0, 0.0 }
 0x29d   : > { %1255 = vrcp.f32 %v793_v2  ;;  %723 = vadd.xlane.f32.xlu1 %v694_v5  ;;  %775 = vadd.xlane.f32.xlu2 %v744_v6  ;;  %v820_v26 = vand.u32 2147483648, %v793_v2  ;;  %v818_v29 = vand.u32 2147483647, %v793_v2  ;;  %vm814_vm9 = vweird.f32 %v793_v2 }
 0x29e   : > { %727 = vadd.xlane.f32.xlu0 %v696_v8 }
 0x29f   : > { %v821_v40 = vor.u32 1.1754944e-38, %v820_v26  ;;  %vm819_vm12 = vcmp.eq.f32.partialorder %v818_v29, 8.507059e+37 }
 0x2a2   : > { %v702_v9 = vpop.xlane.xlu1 %701  ;;  %v748_v10 = vpop.xlane.xlu0 %747 }
 0x2a3   : > { %v1256_v12 = vpop.eup %1255  ;;  %v778_v13 = vsel %vm1531_vm4, %v748_v10, 1.0 }
 0x2a4   : > { %v810_v14 = vmul.f32 %v1256_v12, %v793_v2  ;;  %v794_v20 = vsel %vm498_vm5, %v700_v62, %v778_v13  ;;  %vm815_vm6 = vweird.f32 %v1256_v12  ;;  %v1050_v62 = vsel %vm1916_vm11, %v1537_v21, 0.0 }
 0x2a5   : > { %1257 = vrcp.f32 %v794_v20  ;;  %725 = vadd.xlane.f32.xlu2 %v695_v23  ;;  %vm816_vm10 = vmor %vm814_vm9, %vm815_vm6  ;;  %v834_v1 = vand.u32 2147483648, %v794_v20  ;;  %v832_v6 = vand.u32 2147483647, %v794_v20  ;;  %vm828_vm15 = vweird.f32 %v794_v20 }
 0x2a6   : > { %v811_v24 = vsub.f32 1.0, %v810_v14 }
 0x2a7   : > { %vm833_vm1 = vcmp.eq.f32.partialorder %v832_v6, 8.507059e+37 }
 0x2a8   : > { %v812_v28 = vmul.f32 %v1256_v12, %v811_v24  ;;  %v1051_v24 = vsel %vm1916_vm11, %v1546_v31, 0.0 }
 0x2aa   : > { %v813_v30 = vadd.f32 %v1256_v12, %v812_v28  ;;  %v750_v32 = vpop.xlane.xlu1 %749 }
 0x2ab   : > { %v1258_v37 = vpop.eup %1257  ;;  %v779_v41 = vsel %vm1531_vm4, %v750_v32, 1.0 }
 0x2ac   : > { %v817_v25 = vsel %vm816_vm10, %v1256_v12, %v813_v30  ;;  %v824_v45 = vmul.f32 %v1258_v37, %v794_v20  ;;  %v795_v47 = vsel %vm498_vm5, %v702_v9, %v779_v41  ;;  %vm829_vm14 = vweird.f32 %v1258_v37 }
 0x2ad   : > { %v822_v56 = vsel %vm819_vm12, %v821_v40, %v817_v25  ;;  %1259 = vrcp.f32 %v795_v47  ;;  %vm830_vm0 = vmor %vm828_vm15, %vm829_vm14  ;;  %v848_v26 = vand.u32 2147483648, %v795_v47  ;;  %v846_v29 = vand.u32 2147483647, %v795_v47 }
 0x2ae   : > { %v1033_v58 = vmul.f32 %v1692_v44, %v822_v56  ;;  %v825_v60 = vsub.f32 1.0, %v824_v45  ;;  %v835_v44 = vor.u32 1.1754944e-38, %v834_v1  ;;  %vm842_vm3 = vweird.f32 %v795_v47 }
 0x2af   : > { %vm847_vm7 = vcmp.eq.f32.partialorder %v846_v29, 8.507059e+37 }
 0x2b0   : > { %v1066_v2 = vsel %vm1926_vm13, %v1033_v58, %v1050_v62  ;;  %v826_v5 = vmul.f32 %v1258_v37, %v825_v60 }
 0x2b1   : > { %1082 = vst [vmem:[%s1935_s18] sm:$0xff] %v1066_v2 }
 0x2b2   : > { %v827_v8 = vadd.f32 %v1258_v37, %v826_v5  ;;  %v704_v9 = vpop.xlane.xlu2 %703 }
 0x2b3   : > { %v1260_v10 = vpop.eup %1259 }
 0x2b4   : > { %v831_v12 = vsel %vm830_vm0, %v1258_v37, %v827_v8  ;;  %v838_v13 = vmul.f32 %v1260_v10, %v795_v47  ;;  %vm843_vm2 = vweird.f32 %v1260_v10  ;;  %v1052_v47 = vsel %vm1916_vm11, %v1555_v35, 0.0 }
 0x2b5   : > { %v836_v14 = vsel %vm833_vm1, %v835_v44, %v831_v12  ;;  %vm844_vm6 = vmor %vm842_vm3, %vm843_vm2 }
 0x2b6   : > { %v1034_v21 = vmul.f32 %v1703_v54, %v836_v14  ;;  %v839_v23 = vsub.f32 1.0, %v838_v13  ;;  %v849_v54 = vor.u32 1.1754944e-38, %v848_v26 }
 0x2b8   : > { %v1067_v20 = vsel %vm1926_vm13, %v1034_v21, %v1051_v24  ;;  %v840_v28 = vmul.f32 %v1260_v10, %v839_v23 }
 0x2b9   : > { %1083 = vst [vmem:[%s1935_s18 + $0x8] sm:$0xff] %v1067_v20 }
 0x2ba   : > { %v841_v30 = vadd.f32 %v1260_v10, %v840_v28  ;;  %v752_v32 = vpop.xlane.xlu2 %751  ;;  %v706_v37 = vpop.xlane.xlu0 %705 }
 0x2bb   : > { %v780_v40 = vsel %vm1531_vm4, %v752_v32, 1.0 }
 0x2bc   : > { %v845_v41 = vsel %vm844_vm6, %v1260_v10, %v841_v30  ;;  %v796_v31 = vsel %vm498_vm5, %v704_v9, %v780_v40 }
 0x2bd   : > { %v850_v25 = vsel %vm847_vm7, %v849_v54, %v845_v41  ;;  %1261 = vrcp.f32 %v796_v31  ;;  %v862_v8 = vand.u32 2147483648, %v796_v31  ;;  %v860_v35 = vand.u32 2147483647, %v796_v31 }
 0x2be   : > { %v1035_v45 = vmul.f32 %v1711_v61, %v850_v25  ;;  %vm856_vm9 = vweird.f32 %v796_v31  ;;  %v1053_v54 = vsel %vm1916_vm11, %v1564_v39, 0.0 }
 0x2bf   : > { %v863_v23 = vor.u32 1.1754944e-38, %v862_v8  ;;  %vm861_vm12 = vcmp.eq.f32.partialorder %v860_v35, 8.507059e+37  ;;  %v1054_v35 = vsel %vm1916_vm11, %v1570_v42, 0.0 }
 0x2c0   : > { %v1068_v56 = vsel %vm1926_vm13, %v1035_v45, %v1052_v47 }
 0x2c1   : > { %1084 = vst [vmem:[%s1935_s18 + $0x10] sm:$0xff] %v1068_v56  ;;  %v708_v58 = vpop.xlane.xlu1 %707 }
 0x2c2   : > { %v710_v60 = vpop.xlane.xlu2 %709  ;;  %v754_v62 = vpop.xlane.xlu0 %753 }
 0x2c3   : > { %v1262_v1 = vpop.eup %1261  ;;  %v781_v2 = vsel %vm1531_vm4, %v754_v62, 1.0 }
 0x2c4   : > { %v852_v5 = vmul.f32 %v1262_v1, %v796_v31  ;;  %v797_v6 = vsel %vm498_vm5, %v706_v37, %v781_v2  ;;  %vm857_vm8 = vweird.f32 %v1262_v1 }
 0x2c5   : > { %1263 = vrcp.f32 %v797_v6  ;;  %vm858_vm10 = vmor %vm856_vm9, %vm857_vm8  ;;  %v876_v40 = vand.u32 2147483648, %v797_v6  ;;  %v874_v25 = vand.u32 2147483647, %v797_v6  ;;  %vm870_vm15 = vweird.f32 %v797_v6 }
 0x2c6   : > { %v853_v61 = vsub.f32 1.0, %v852_v5 }
 0x2c7   : > { %vm875_vm1 = vcmp.eq.f32.partialorder %v874_v25, 8.507059e+37 }
 0x2c8   : > { %v854_v9 = vmul.f32 %v1262_v1, %v853_v61 }
 0x2c9   : > { %v756_v10 = vpop.xlane.xlu1 %755 }
 0x2ca   : > { %v855_v44 = vadd.f32 %v1262_v1, %v854_v9  ;;  %v782_v12 = vsel %vm1531_vm4, %v756_v10, 1.0  ;;  %v758_v13 = vpop.xlane.xlu2 %757  ;;  %v712_v14 = vpop.xlane.xlu0 %711 }
 0x2cb   : > { %v1264_v21 = vpop.eup %1263  ;;  %v798_v24 = vsel %vm498_vm5, %v708_v58, %v782_v12  ;;  %v783_v26 = vsel %vm1531_vm4, %v758_v13, 1.0  ;;  %v877_v58 = vor.u32 1.1754944e-38, %v876_v40  ;;  %v1055_v40 = vsel %vm1916_vm11, %v1579_v46, 0.0 }
 0x2cc   : > { %v859_v20 = vsel %vm858_vm10, %v1262_v1, %v855_v44  ;;  %v866_v28 = vmul.f32 %v1264_v21, %v797_v6  ;;  %1265 = vrcp.f32 %v798_v24  ;;  %v799_v37 = vsel %vm498_vm5, %v710_v60, %v783_v26 }
 0x2cd   : > { %v864_v29 = vsel %vm861_vm12, %v863_v23, %v859_v20  ;;  %1267 = vrcp.f32 %v799_v37  ;;  %vm871_vm14 = vweird.f32 %v1264_v21  ;;  %v890_v8 = vand.u32 2147483648, %v798_v24 }
 0x2ce   : > { %v1036_v30 = vmul.f32 %v1734_v17, %v864_v29  ;;  %v867_v32 = vsub.f32 1.0, %v866_v28  ;;  %vm872_vm0 = vmor %vm870_vm15, %vm871_vm14  ;;  %v888_v44 = vand.u32 2147483647, %v798_v24  ;;  %vm884_vm3 = vweird.f32 %v798_v24 }
 0x2cf   : > { %v891_v23 = vor.u32 1.1754944e-38, %v890_v8  ;;  %v902_v26 = vand.u32 2147483647, %v799_v37  ;;  %vm898_vm9 = vweird.f32 %v799_v37 }
 0x2d0   : > { %v1069_v41 = vsel %vm1926_vm13, %v1036_v30, %v1053_v54  ;;  %v868_v31 = vmul.f32 %v1264_v21, %v867_v32  ;;  %vm889_vm8 = vcmp.eq.f32.partialorder %v888_v44, 8.507059e+37 }
 0x2d1   : > { %1085 = vst [vmem:[%s1935_s18 + $0x18] sm:$0xff] %v1069_v41  ;;  %vm903_vm12 = vcmp.eq.f32.partialorder %v902_v26, 8.507059e+37 }
 0x2d2   : > { %v1266_v45 = vpop.eup %1265  ;;  %v869_v47 = vadd.f32 %v1264_v21, %v868_v31  ;;  %v714_v17 = vpop.xlane.xlu1 %713 }
 0x2d3   : > { %v760_v56 = vpop.xlane.xlu0 %759  ;;  %v880_v60 = vmul.f32 %v1266_v45, %v798_v24  ;;  %v1268_v2 = vpop.eup %1267  ;;  %vm885_vm2 = vweird.f32 %v1266_v45 }
 0x2d4   : > { %v784_v39 = vsel %vm1531_vm4, %v760_v56, 1.0  ;;  %v873_v62 = vsel %vm872_vm0, %v1264_v21, %v869_v47  ;;  %v894_v9 = vmul.f32 %v1268_v2, %v799_v37  ;;  %v904_v21 = vand.u32 2147483648, %v799_v37  ;;  %vm886_vm6 = vmor %vm884_vm3, %vm885_vm2 }
 0x2d5   : > { %v1985_v1 = vsel %vm498_vm5, %v712_v14, %v784_v39  ;;  %v878_v5 = vsel %vm875_vm1, %v877_v58, %v873_v62  ;;  %v881_v61 = vsub.f32 1.0, %v880_v60  ;;  %vm899_vm7 = vweird.f32 %v1268_v2 }
 0x2d6   : > { %1269 = vrcp.f32 %v1985_v1  ;;  %v1037_v6 = vmul.f32 %v1751_v38, %v878_v5  ;;  %v895_v13 = vsub.f32 1.0, %v894_v9  ;;  %vm900_vm10 = vmor %vm898_vm9, %vm899_vm7  ;;  %v905_v31 = vor.u32 1.1754944e-38, %v904_v21 }
 0x2d7   : > { %v882_v10 = vmul.f32 %v1266_v45, %v881_v61  ;;  %v918_v58 = vand.u32 2147483648, %v1985_v1  ;;  %v916_v60 = vand.u32 2147483647, %v1985_v1  ;;  %vm912_vm15 = vweird.f32 %v1985_v1 }
 0x2d8   : > { %v1070_v12 = vsel %vm1926_vm13, %v1037_v6, %v1054_v35  ;;  %v896_v38 = vmul.f32 %v1268_v2, %v895_v13 }
 0x2d9   : > { %1086 = vst [vmem:[%s1935_s18 + $0x20] sm:$0xff] %v1070_v12  ;;  %v883_v14 = vadd.f32 %v1266_v45, %v882_v10  ;;  %vm917_vm1 = vcmp.eq.f32.partialorder %v916_v60, 8.507059e+37  ;;  %v1057_v10 = vsel %vm1916_vm11, %v1600_v55, 0.0 }
 0x2da   : > { %v716_v20 = vpop.xlane.xlu2 %715  ;;  %v762_v28 = vpop.xlane.xlu1 %761  ;;  %v897_v54 = vadd.f32 %v1268_v2, %v896_v38 }
 0x2db   : > { %v887_v42 = vsel %vm886_vm6, %v1266_v45, %v883_v14  ;;  %v785_v30 = vsel %vm1531_vm4, %v762_v28, 1.0 }
 0x2dc   : > { %v1270_v29 = vpop.eup %1269  ;;  %v892_v32 = vsel %vm889_vm8, %v891_v23, %v887_v42  ;;  %v801_v25 = vsel %vm498_vm5, %v714_v17, %v785_v30  ;;  %v901_v45 = vsel %vm900_vm10, %v1268_v2, %v897_v54  ;;  %v1056_v17 = vsel %vm1916_vm11, %v1588_v50, 0.0 }
 0x2dd   : > { %v908_v24 = vmul.f32 %v1270_v29, %v1985_v1  ;;  %v1038_v41 = vmul.f32 %v1765_v51, %v892_v32  ;;  %1271 = vrcp.f32 %v801_v25  ;;  %v906_v56 = vsel %vm903_vm12, %v905_v31, %v901_v45 }
 0x2de   : > { %v1039_v46 = vmul.f32 %v1767_v52, %v906_v56  ;;  %vm913_vm14 = vweird.f32 %v1270_v29  ;;  %v919_v52 = vor.u32 1.1754944e-38, %v918_v58  ;;  %v932_v13 = vand.u32 2147483648, %v801_v25 }
 0x2df   : > { %v909_v47 = vsub.f32 1.0, %v908_v24  ;;  %v1071_v37 = vsel %vm1926_vm13, %v1038_v41, %v1055_v40  ;;  %vm914_vm0 = vmor %vm912_vm15, %vm913_vm14  ;;  %v930_v21 = vand.u32 2147483647, %v801_v25  ;;  %vm926_vm3 = vweird.f32 %v801_v25 }
 0x2e0   : > { %1087 = vst [vmem:[%s1935_s18 + $0x28] sm:$0xff] %v1071_v37  ;;  %v1072_v39 = vsel %vm1926_vm13, %v1039_v46, %v1056_v17  ;;  %v933_v55 = vor.u32 1.1754944e-38, %v932_v13  ;;  %v1058_v40 = vsel %vm1916_vm11, %v1609_v59, 0.0  ;;  %v1060_v13 = vsel %vm1916_vm11, %v1627_v3, 0.0 }
 0x2e1   : > { %v910_v51 = vmul.f32 %v1270_v29, %v909_v47  ;;  %1088 = vst [vmem:[%s1935_s18 + $0x30] sm:$0xff] %v1072_v39  ;;  %vm931_vm7 = vcmp.eq.f32.partialorder %v930_v21, 8.507059e+37  ;;  %v1059_v39 = vsel %vm1916_vm11, %v1618_v63, 0.0 }
 0x2e2   : > { %v764_v2 = vpop.xlane.xlu2 %763  ;;  %v718_v5 = vpop.xlane.xlu0 %717 }
 0x2e3   : > { %v911_v62 = vadd.f32 %v1270_v29, %v910_v51  ;;  %v786_v61 = vsel %vm1531_vm4, %v764_v2, 1.0  ;;  %v1272_v6 = vpop.eup %1271 }
 0x2e4   : > { %v802_v50 = vsel %vm498_vm5, %v716_v20, %v786_v61  ;;  %v922_v35 = vmul.f32 %v1272_v6, %v801_v25  ;;  %vm927_vm2 = vweird.f32 %v1272_v6 }
 0x2e5   : > { %v915_v8 = vsel %vm914_vm0, %v1270_v29, %v911_v62  ;;  %1273 = vrcp.f32 %v802_v50  ;;  %vm928_vm6 = vmor %vm926_vm3, %vm927_vm2  ;;  %v946_v24 = vand.u32 2147483648, %v802_v50  ;;  %v944_v31 = vand.u32 2147483647, %v802_v50 }
 0x2e6   : > { %v920_v9 = vsel %vm917_vm1, %v919_v52, %v915_v8  ;;  %v923_v44 = vsub.f32 1.0, %v922_v35  ;;  %vm940_vm9 = vweird.f32 %v802_v50 }
 0x2e7   : > { %v1040_v1 = vmul.f32 %v1784_v4, %v920_v9  ;;  %v947_v56 = vor.u32 1.1754944e-38, %v946_v24  ;;  %vm945_vm12 = vcmp.eq.f32.partialorder %v944_v31, 8.507059e+37 }
 0x2e8   : > { %v924_v14 = vmul.f32 %v1272_v6, %v923_v44 }
 0x2e9   : > { %v1073_v12 = vsel %vm1926_vm13, %v1040_v1, %v1057_v10 }
 0x2ea   : > { %1089 = vst [vmem:[%s1935_s18 + $0x38] sm:$0xff] %v1073_v12  ;;  %v720_v23 = vpop.xlane.xlu1 %719  ;;  %v766_v38 = vpop.xlane.xlu0 %765  ;;  %v925_v20 = vadd.f32 %v1272_v6, %v924_v14 }
 0x2eb   : > { %v1274_v26 = vpop.eup %1273  ;;  %v787_v4 = vsel %vm1531_vm4, %v766_v38, 1.0 }
 0x2ec   : > { %v936_v28 = vmul.f32 %v1274_v26, %v802_v50  ;;  %v803_v29 = vsel %vm498_vm5, %v718_v5, %v787_v4  ;;  %v929_v42 = vsel %vm928_vm6, %v1272_v6, %v925_v20  ;;  %vm941_vm8 = vweird.f32 %v1274_v26 }
 0x2ed   : > { %1275 = vrcp.f32 %v803_v29  ;;  %v934_v30 = vsel %vm931_vm7, %v933_v55, %v929_v42  ;;  %vm942_vm10 = vmor %vm940_vm9, %vm941_vm8  ;;  %v960_v62 = vand.u32 2147483648, %v803_v29  ;;  %v958_v52 = vand.u32 2147483647, %v803_v29 }
 0x2ee   : > { %v937_v32 = vsub.f32 1.0, %v936_v28  ;;  %v1041_v54 = vmul.f32 %v1801_v18, %v934_v30  ;;  %vm954_vm15 = vweird.f32 %v803_v29 }
 0x2ef   : > { %v961_v63 = vor.u32 1.1754944e-38, %v960_v62  ;;  %vm959_vm1 = vcmp.eq.f32.partialorder %v958_v52, 8.507059e+37 }
 0x2f0   : > { %v938_v41 = vmul.f32 %v1274_v26, %v937_v32  ;;  %v1074_v25 = vsel %vm1926_vm13, %v1041_v54, %v1058_v40  ;;  %v1061_v54 = vsel %vm1916_vm11, %v1636_v7, 0.0 }
 0x2f1   : > { %1090 = vst [vmem:[%s1935_s18 + $0x40] sm:$0xff] %v1074_v25 }
 0x2f2   : > { %v939_v45 = vadd.f32 %v1274_v26, %v938_v41  ;;  %v768_v47 = vpop.xlane.xlu1 %767 }
 0x2f3   : > { %v1276_v37 = vpop.eup %1275  ;;  %v788_v18 = vsel %vm1531_vm4, %v768_v47, 1.0 }
 0x2f4   : > { %v943_v58 = vsel %vm942_vm10, %v1274_v26, %v939_v45  ;;  %v950_v59 = vmul.f32 %v1276_v37, %v803_v29  ;;  %v804_v46 = vsel %vm498_vm5, %v720_v23, %v788_v18  ;;  %vm955_vm14 = vweird.f32 %v1276_v37 }
 0x2f5   : > { %v948_v51 = vsel %vm945_vm12, %v947_v56, %v943_v58  ;;  %1277 = vrcp.f32 %v804_v46  ;;  %vm956_vm0 = vmor %vm954_vm15, %vm955_vm14  ;;  %v974_v14 = vand.u32 2147483648, %v804_v46  ;;  %v972_v38 = vand.u32 2147483647, %v804_v46 }
 0x2f6   : > { %v1042_v60 = vmul.f32 %v1815_v33, %v948_v51  ;;  %v951_v17 = vsub.f32 1.0, %v950_v59  ;;  %vm968_vm3 = vweird.f32 %v804_v46 }
 0x2f7   : > { %vm973_vm7 = vcmp.eq.f32.partialorder %v972_v38, 8.507059e+37  ;;  %v1063_v38 = vsel %vm1916_vm11, %v1654_v15, 0.0 }
 0x2f8   : > { %v1075_v2 = vsel %vm1926_vm13, %v1042_v60, %v1059_v39  ;;  %v952_v5 = vmul.f32 %v1276_v37, %v951_v17  ;;  %v770_v61 = vpop.xlane.xlu2 %769  ;;  %v722_v6 = vpop.xlane.xlu0 %721 }
 0x2f9   : > { %1091 = vst [vmem:[%s1935_s18 + $0x48] sm:$0xff] %v1075_v2  ;;  %v789_v8 = vsel %vm1531_vm4, %v770_v61, 1.0 }
 0x2fa   : > { %v953_v50 = vadd.f32 %v1276_v37, %v952_v5  ;;  %v805_v33 = vsel %vm498_vm5, %v722_v6, %v789_v8 }
 0x2fb   : > { %v1278_v9 = vpop.eup %1277  ;;  %1279 = vrcp.f32 %v805_v33  ;;  %v988_v3 = vand.u32 2147483648, %v805_v33  ;;  %v986_v32 = vand.u32 2147483647, %v805_v33  ;;  %vm982_vm9 = vweird.f32 %v805_v33 }
 0x2fc   : > { %v957_v35 = vsel %vm956_vm0, %v1276_v37, %v953_v50  ;;  %v964_v1 = vmul.f32 %v1278_v9, %v804_v46  ;;  %vm969_vm2 = vweird.f32 %v1278_v9  ;;  %v1062_v37 = vsel %vm1916_vm11, %v1645_v11, 0.0 }
 0x2fd   : > { %v962_v10 = vsel %vm959_vm1, %v961_v63, %v957_v35  ;;  %vm970_vm6 = vmor %vm968_vm3, %vm969_vm2  ;;  %v989_v31 = vor.u32 1.1754944e-38, %v988_v3  ;;  %vm987_vm12 = vcmp.eq.f32.partialorder %v986_v32, 8.507059e+37  ;;  %v1064_v32 = vsel %vm1916_vm11, %v1663_v19, 0.0 }
 0x2fe   : > { %v1043_v44 = vmul.f32 %v1829_v48, %v962_v10  ;;  %v965_v12 = vsub.f32 1.0, %v964_v1  ;;  %v975_v48 = vor.u32 1.1754944e-38, %v974_v14 }
 0x300   : > { %v1076_v21 = vsel %vm1926_vm13, %v1043_v44, %v1060_v13  ;;  %v966_v23 = vmul.f32 %v1278_v9, %v965_v12  ;;  %v772_v25 = vpop.xlane.xlu0 %771 }
 0x301   : > { %v1280_v26 = vpop.eup %1279  ;;  %1092 = vst [vmem:[%s1935_s18 + $0x50] sm:$0xff] %v1076_v21  ;;  %v790_v56 = vsel %vm1531_vm4, %v772_v25, 1.0 }
 0x302   : > { %v967_v20 = vadd.f32 %v1278_v9, %v966_v23  ;;  %v978_v4 = vmul.f32 %v1280_v26, %v805_v33  ;;  %vm983_vm8 = vweird.f32 %v1280_v26 }
 0x303   : > { %vm984_vm10 = vmor %vm982_vm9, %vm983_vm8 }
 0x304   : > { %v971_v55 = vsel %vm970_vm6, %v1278_v9, %v967_v20  ;;  %v979_v28 = vsub.f32 1.0, %v978_v4 }
 0x305   : > { %v976_v29 = vsel %vm973_vm7, %v975_v48, %v971_v55 }
 0x306   : > { %v1044_v42 = vmul.f32 %v1837_v57, %v976_v29  ;;  %v980_v30 = vmul.f32 %v1280_v26, %v979_v28 }
 0x308   : > { %v1077_v24 = vsel %vm1926_vm13, %v1044_v42, %v1061_v54  ;;  %v981_v40 = vadd.f32 %v1280_v26, %v980_v30  ;;  %v774_v41 = vpop.xlane.xlu1 %773 }
 0x309   : > { %1093 = vst [vmem:[%s1935_s18 + $0x58] sm:$0xff] %v1077_v24  ;;  %v791_v60 = vsel %vm1531_vm4, %v774_v41, 1.0 }
 0x30a   : > { %v985_v45 = vsel %vm984_vm10, %v1280_v26, %v981_v40 }
 0x30b   : > { %v990_v57 = vsel %vm987_vm12, %v989_v31, %v985_v45 }
 0x30c   : > { %v1045_v47 = vmul.f32 %v1860_v16, %v990_v57 }
 0x30e   : > { %v1078_v7 = vsel %vm1926_vm13, %v1045_v47, %v1062_v37 }
 0x30f   : > { %1094 = vst [vmem:[%s1935_s18 + $0x60] sm:$0xff] %v1078_v7 }
 0x310   : > { %v724_v18 = vpop.xlane.xlu1 %723  ;;  %v776_v58 = vpop.xlane.xlu2 %775 }
 0x311   : > { %v806_v59 = vsel %vm498_vm5, %v724_v18, %v790_v56  ;;  %v792_v46 = vsel %vm1531_vm4, %v776_v58, 1.0  ;;  %v728_v16 = vpop.xlane.xlu0 %727 }
 0x312   : > { %1281 = vrcp.f32 %v806_v59  ;;  %v808_v11 = vsel %vm498_vm5, %v728_v16, %v792_v46  ;;  %v1000_v61 = vand.u32 2147483647, %v806_v59  ;;  %v1002_v6 = vand.u32 2147483648, %v806_v59 }
 0x313   : > { %1283 = vrcp.f32 %v808_v11  ;;  %vm996_vm15 = vweird.f32 %v806_v59  ;;  %v1030_v33 = vand.u32 2147483648, %v808_v11  ;;  %v1028_v27 = vand.u32 2147483647, %v808_v11 }
 0x314   : > { %vm1001_vm1 = vcmp.eq.f32.partialorder %v1000_v61, 8.507059e+37  ;;  %v1003_v22 = vor.u32 1.1754944e-38, %v1002_v6 }
 0x315   : > { %v1031_v13 = vor.u32 1.1754944e-38, %v1030_v33  ;;  %vm1029_vm3 = vcmp.eq.f32.partialorder %v1028_v27, 8.507059e+37 }
 0x318   : > { %v1282_v51 = vpop.eup %1281  ;;  %v726_v17 = vpop.xlane.xlu2 %725 }
 0x319   : > { %v992_v39 = vmul.f32 %v1282_v51, %v806_v59  ;;  %v807_v62 = vsel %vm498_vm5, %v726_v17, %v791_v60  ;;  %v1284_v2 = vpop.eup %1283  ;;  %vm997_vm14 = vweird.f32 %v1282_v51  ;;  %vm1024_vm5 = vweird.f32 %v808_v11 }
 0x31a   : > { %1285 = vrcp.f32 %v807_v62  ;;  %v1020_v52 = vmul.f32 %v1284_v2, %v808_v11  ;;  %vm1025_vm0 = vweird.f32 %v1284_v2  ;;  %vm998_vm4 = vmor %vm996_vm15, %vm997_vm14  ;;  %v1014_v20 = vand.u32 2147483647, %v807_v62 }
 0x31b   : > { %v993_v5 = vsub.f32 1.0, %v992_v39  ;;  %vm1026_vm2 = vmor %vm1024_vm5, %vm1025_vm0  ;;  %v1016_v4 = vand.u32 2147483648, %v807_v62  ;;  %vm1010_vm7 = vweird.f32 %v807_v62 }
 0x31c   : > { %v1021_v50 = vsub.f32 1.0, %v1020_v52  ;;  %vm1015_vm9 = vcmp.eq.f32.partialorder %v1014_v20, 8.507059e+37 }
 0x31d   : > { %v994_v8 = vmul.f32 %v1282_v51, %v993_v5  ;;  %v1017_v3 = vor.u32 1.1754944e-38, %v1016_v4 }
 0x31e   : > { %v1022_v63 = vmul.f32 %v1284_v2, %v1021_v50 }
 0x31f   : > { %v995_v9 = vadd.f32 %v1282_v51, %v994_v8 }
 0x320   : > { %v1286_v35 = vpop.eup %1285  ;;  %v1023_v10 = vadd.f32 %v1284_v2, %v1022_v63 }
 0x321   : > { %v999_v1 = vsel %vm998_vm4, %v1282_v51, %v995_v9  ;;  %v1006_v44 = vmul.f32 %v1286_v35, %v807_v62  ;;  %vm1011_vm6 = vweird.f32 %v1286_v35 }
 0x322   : > { %v1004_v12 = vsel %vm1001_vm1, %v1003_v22, %v999_v1  ;;  %v1027_v21 = vsel %vm1026_vm2, %v1284_v2, %v1023_v10  ;;  %vm1012_vm8 = vmor %vm1010_vm7, %vm1011_vm6 }
 0x323   : > { %v1046_v14 = vmul.f32 %v1874_v36, %v1004_v12  ;;  %v1007_v23 = vsub.f32 1.0, %v1006_v44  ;;  %v1032_v26 = vsel %vm1029_vm3, %v1031_v13, %v1027_v21  ;;  %v1065_v36 = vsel %vm1916_vm11, %v1678_v34, 0.0 }
 0x324   : > { %v1048_v55 = vmul.f32 %v1890_v0, %v1032_v26 }
 0x325   : > { %v1079_v48 = vsel %vm1926_vm13, %v1046_v14, %v1063_v38  ;;  %v1008_v28 = vmul.f32 %v1286_v35, %v1007_v23 }
 0x326   : > { %1095 = vst [vmem:[%s1935_s18 + $0x68] sm:$0xff] %v1079_v48  ;;  %v1081_v29 = vsel %vm1926_vm13, %v1048_v55, %v1065_v36 }
 0x327   : > { %v1009_v15 = vadd.f32 %v1286_v35, %v1008_v28  ;;  %1097 = vst [vmem:[%s1935_s18 + $0x78] sm:$0xff] %v1081_v29 }
 0x329   : > { %v1013_v42 = vsel %vm1012_vm8, %v1286_v35, %v1009_v15 }
 0x32a   : > { %v1018_v30 = vsel %vm1015_vm9, %v1017_v3, %v1013_v42 }
 0x32b   : > { %v1047_v0 = vmul.f32 %v1885_v53, %v1018_v30 }
 0x32d   : > { %v1080_v34 = vsel %vm1926_vm13, %v1047_v0, %v1064_v32 }
 0x32e   : > { %1096 = vst [vmem:[%s1935_s18 + $0x70] sm:$0xff] %v1080_v34 }
 0x32f PF: > { %s12_s9 = sadd.s32 1, %s1293_s9  }
 0x330   : > { %p9_p4 = scmp.ge.s32.totalorder %s12_s9, 4  }
 0x332   :  { %11 = sbr.rel (!%p9_p4) target bundleno = 1 (0x1), region = 58 }

</bundles_post_ra>
